<compile_context>
chip_gen: v7x
topology: tpu7x:2x2x1
jax: 0.10.0
libtpu: 0.0.40
codegen_flags: <defaults>
</compile_context>

<pallas_src>
import functools

import jax
import jax.numpy as jnp
from jax.experimental import pallas as pl
from jax.experimental.pallas import tpu as pltpu


def _convmixer_kernel(x_ref, w_ref, b_ref, o_ref, xp_ref, acc_ref,
                      *, H, W, C, KH, KW):
    # x_ref  : (1, H, W, C)          f32  unpadded NHWC input (one batch elem)
    # w_ref  : (KH*KW, Cp, Cp)       bf16 dense block-diagonal grouped weight
    # b_ref  : (1, Cp)               f32  bias (zeros in padded channels)
    # o_ref  : (1, H*W, Cp)          f32  output sequence (lane-dense)
    # xp_ref : (H+KH-1, W+KW-1, Cp)  bf16 scratch: zero-padded halo image
    # acc_ref: (H*W, Cp)             f32  accumulator scratch
    ph, pw = KH // 2, KW // 2
    Cp = o_ref.shape[-1]

    # Build the padded bf16 image in VMEM (replaces HBM-side jnp.pad).
    xp_ref[...] = jnp.zeros_like(xp_ref)
    xp_ref[ph:ph + H, pw:pw + W, :C] = x_ref[0].astype(xp_ref.dtype)

    # KH*KW shifted-slab MXU matmuls with M = H*W, f32 accumulation.
    acc_ref[...] = jnp.zeros_like(acc_ref)
    for t in range(KH * KW):
        dh, dw = divmod(t, KW)
        patch = xp_ref[dh:dh + H, dw:dw + W, :].reshape(H * W, Cp)  # bf16
        acc_ref[...] += jnp.dot(patch, w_ref[t],
                                preferred_element_type=jnp.float32)

    # One bias add + one lane-dense store of the whole image.
    o_ref[0] = (acc_ref[...] + b_ref[...]).astype(o_ref.dtype)


def conv_mixer_forward(x, weight, bias, *, HW, num_heads):
    """x: [B, N, C] f32.  weight: [C, C//num_heads, KH, KW].  bias: [C]."""
    B, N, C = x.shape
    H, W = HW
    assert N == H * W
    KH, KW = weight.shape[2], weight.shape[3]
    Cg = C // num_heads
    Cp = ((C + 127) // 128) * 128          # lane-dense channel width
    Hp, Wp = H + KH - 1, W + KW - 1

    # --- glue: layout + parameter packing (plain JAX, all tiny) ------------
    x_nhwc = x.reshape(B, H, W, C)          # row-major reshape: no data copy

    # TODO(synk): for large C (>~256) with many heads, keep per-group
    # (KH*KW, num_heads, Cg, Cg) weights + per-group matmuls instead of the
    # dense block-diagonal expansion (num_heads x FLOP / VMEM waste); dense
    # expansion to the 128-wide MXU is free at this small C.
    w_dense = jnp.zeros((KH * KW, Cp, Cp), jnp.float32)
    for g in range(num_heads):
        blk = jnp.transpose(weight[g * Cg:(g + 1) * Cg], (2, 3, 1, 0))
        w_dense = w_dense.at[:, g * Cg:(g + 1) * Cg,
                             g * Cg:(g + 1) * Cg].set(
                                 blk.reshape(KH * KW, Cg, Cg))
    w_bf16 = w_dense.astype(jnp.bfloat16)
    bias_p = jnp.zeros((1, Cp), jnp.float32).at[0, :C].set(bias)

    kernel = functools.partial(_convmixer_kernel, H=H, W=W, C=C, KH=KH, KW=KW)

    out_p = pl.pallas_call(
        kernel,
        out_shape=jax.ShapeDtypeStruct((B, H * W, Cp), x.dtype),
        grid_spec=pltpu.PrefetchScalarGridSpec(
            num_scalar_prefetch=0,
            grid=(B,),
            in_specs=[
                pl.BlockSpec((1, H, W, C), lambda b: (b, 0, 0, 0)),
                pl.BlockSpec((KH * KW, Cp, Cp), lambda b: (0, 0, 0)),
                pl.BlockSpec((1, Cp), lambda b: (0, 0)),
            ],
            out_specs=pl.BlockSpec((1, H * W, Cp), lambda b: (b, 0, 0)),
            scratch_shapes=[
                pltpu.VMEM((Hp, Wp, Cp), jnp.bfloat16),   # padded image
                pltpu.VMEM((H * W, Cp), jnp.float32),     # f32 accumulator
            ]),
        compiler_params=pltpu.CompilerParams(
            dimension_semantics=("parallel",),
            vmem_limit_bytes=48 * 1024 * 1024),
    )(x_nhwc, w_bf16, bias_p)

    # Drop padded channels; sequence layout [B, N, C] is already correct.
    return out_p[:, :, :C]


def _reference(x, weight, bias, *, HW, num_heads):
    B, N, C = x.shape
    H, W = HW
    KH, KW = weight.shape[2], weight.shape[3]
    x_nhwc = x.reshape(B, H, W, C)
    w_hwio = jnp.transpose(weight, (2, 3, 1, 0))  # (KH, KW, Cg, C)
    out = jax.lax.conv_general_dilated(
        x_nhwc, w_hwio, window_strides=(1, 1),
        padding=((KH // 2, KH // 2), (KW // 2, KW // 2)),
        dimension_numbers=("NHWC", "HWIO", "NHWC"),
        feature_group_count=num_heads)
    out = out + bias[None, None, None, :]
    return out.reshape(B, N, C)


if __name__ == "__main__":
    # Small, conv-compatible shapes.
    B = 2
    dim = 32
    num_heads = 4
    HW = [8, 8]
    local_k = [3, 3]
    N = HW[0] * HW[1]

    key = jax.random.PRNGKey(0)
    kx, kw, kb = jax.random.split(key, 3)
    x = jax.random.normal(kx, (B, N, dim), dtype=jnp.float32)
    # Conv2d(dim, dim, local_k, groups=num_heads) weight/bias shapes.
    weight = jax.random.normal(
        kw, (dim, dim // num_heads, local_k[0], local_k[1]),
        dtype=jnp.float32) * 0.1
    bias = jax.random.normal(kb, (dim,), dtype=jnp.float32) * 0.1

    out = conv_mixer_forward(x, weight, bias, HW=HW, num_heads=num_heads)
    out = jax.block_until_ready(out)

    ref = _reference(x, weight, bias, HW=HW, num_heads=num_heads)
    assert out.shape == (B, N, dim)
    # bf16 activations/weights with f32 accumulation -> looser tolerance.
    assert jnp.allclose(out, ref, atol=2e-2, rtol=2e-2), (
        "mismatch vs reference, max abs diff = "
        f"{float(jnp.max(jnp.abs(out - ref)))}")

    print("KERNEL_OK")
</pallas_src>

<mosaic_0001>
module attributes {stable_mosaic.version = 11 : i64} {
  func.func @_convmixer_kernel(%arg0: i32, %arg1: memref<1x8x8x32xf32, #tpu.memory_space<vmem>>, %arg2: memref<9x128x128xbf16, #tpu.memory_space<vmem>>, %arg3: memref<1x128xf32, #tpu.memory_space<vmem>>, %arg4: memref<1x64x128xf32, #tpu.memory_space<vmem>>, %arg5: memref<10x10x128xbf16, #tpu.memory_space<vmem>>, %arg6: memref<64x128xf32, #tpu.memory_space<vmem>>) attributes {dimension_semantics = [#tpu.dimension_semantics<parallel>], iteration_bounds = array<i64: 2>, scalar_prefetch = 0 : i64, scratch_operands = 2 : i64, tpu.core_type = #tpu.core_type<tc>, window_params = [{transform_indices = @transform_0, window_bounds = array<i64: 1, 8, 8, 32>}, {pipeline_mode = #tpu.pipeline_mode<synchronous>, transform_indices = @transform_1, window_bounds = array<i64: 9, 128, 128>}, {pipeline_mode = #tpu.pipeline_mode<synchronous>, transform_indices = @transform_2, window_bounds = array<i64: 1, 128>}, {transform_indices = @transform_3, window_bounds = array<i64: 1, 64, 128>}]} {
    %cst = arith.constant 0.000000e+00 : bf16
    %0 = vector.broadcast %cst : bf16 to vector<10x10x128xbf16>
    %c0 = arith.constant 0 : index
    %c0_0 = arith.constant 0 : index
    %c0_1 = arith.constant 0 : index
    %1 = vector.load %arg5[%c0, %c0_0, %c0_1] : memref<10x10x128xbf16, #tpu.memory_space<vmem>>, vector<10x10x128xbf16>
    tpu.vector_store %arg5[%c0, %c0_0, %c0_1], %0 {strides = array<i32>} : memref<10x10x128xbf16, #tpu.memory_space<vmem>>, vector<10x10x128xbf16>,
    %c0_2 = arith.constant 0 : index
    %c0_3 = arith.constant 0 : index
    %c0_4 = arith.constant 0 : index
    %c0_5 = arith.constant 0 : index
    %2 = vector.load %arg1[%c0_2, %c0_3, %c0_4, %c0_5] : memref<1x8x8x32xf32, #tpu.memory_space<vmem>>, vector<1x8x8x32xf32>
    %3 = vector.shape_cast %2 : vector<1x8x8x32xf32> to vector<8x8x32xf32>
    %4 = arith.truncf %3 : vector<8x8x32xf32> to vector<8x8x32xbf16>
    %c1 = arith.constant 1 : index
    %c1_6 = arith.constant 1 : index
    %c0_7 = arith.constant 0 : index
    %5 = vector.load %arg5[%c1, %c1_6, %c0_7] : memref<10x10x128xbf16, #tpu.memory_space<vmem>>, vector<8x8x32xbf16>
    tpu.vector_store %arg5[%c1, %c1_6, %c0_7], %4 {strides = array<i32>} : memref<10x10x128xbf16, #tpu.memory_space<vmem>>, vector<8x8x32xbf16>,
    %cst_8 = arith.constant 0.000000e+00 : f32
    %6 = vector.broadcast %cst_8 : f32 to vector<64x128xf32>
    %c0_9 = arith.constant 0 : index
    %c0_10 = arith.constant 0 : index
    %7 = vector.load %arg6[%c0_9, %c0_10] : memref<64x128xf32, #tpu.memory_space<vmem>>, vector<64x128xf32>
    tpu.vector_store %arg6[%c0_9, %c0_10], %6 {strides = array<i32>} : memref<64x128xf32, #tpu.memory_space<vmem>>, vector<64x128xf32>,
    %c0_11 = arith.constant 0 : index
    %c0_12 = arith.constant 0 : index
    %c0_13 = arith.constant 0 : index
    %8 = vector.load %arg5[%c0_11, %c0_12, %c0_13] : memref<10x10x128xbf16, #tpu.memory_space<vmem>>, vector<8x8x128xbf16>
    %9 = vector.shape_cast %8 : vector<8x8x128xbf16> to vector<64x128xbf16>
    %c0_14 = arith.constant 0 : index
    %c0_15 = arith.constant 0 : index
    %10 = vector.load %arg6[%c0_14, %c0_15] : memref<64x128xf32, #tpu.memory_space<vmem>>, vector<64x128xf32>
    %c0_16 = arith.constant 0 : index
    %c0_17 = arith.constant 0 : index
    %c0_18 = arith.constant 0 : index
    %11 = vector.load %arg2[%c0_16, %c0_17, %c0_18] : memref<9x128x128xbf16, #tpu.memory_space<vmem>>, vector<1x128x128xbf16>
    %12 = vector.shape_cast %11 : vector<1x128x128xbf16> to vector<128x128xbf16>
    %cst_19 = arith.constant dense<0.000000e+00> : vector<64x128xf32>
    %13 = tpu.matmul %9, %12, %cst_19 {dimension_numbers = #tpu.dot_dimension_numbers<[1], [0], [0], [1], [0, 0, 1, 1], [], []>} : vector<64x128xbf16>, vector<128x128xbf16>, vector<64x128xf32> -> vector<64x128xf32>
    %14 = arith.addf %10, %13 : vector<64x128xf32>
    %c0_20 = arith.constant 0 : index
    %c0_21 = arith.constant 0 : index
    %15 = vector.load %arg6[%c0_20, %c0_21] : memref<64x128xf32, #tpu.memory_space<vmem>>, vector<64x128xf32>
    tpu.vector_store %arg6[%c0_20, %c0_21], %14 {strides = array<i32>} : memref<64x128xf32, #tpu.memory_space<vmem>>, vector<64x128xf32>,
    %c0_22 = arith.constant 0 : index
    %c1_23 = arith.constant 1 : index
    %c0_24 = arith.constant 0 : index
    %16 = vector.load %arg5[%c0_22, %c1_23, %c0_24] : memref<10x10x128xbf16, #tpu.memory_space<vmem>>, vector<8x8x128xbf16>
    %17 = vector.shape_cast %16 : vector<8x8x128xbf16> to vector<64x128xbf16>
    %c0_25 = arith.constant 0 : index
    %c0_26 = arith.constant 0 : index
    %18 = vector.load %arg6[%c0_25, %c0_26] : memref<64x128xf32, #tpu.memory_space<vmem>>, vector<64x128xf32>
    %c1_27 = arith.constant 1 : index
    %c0_28 = arith.constant 0 : index
    %c0_29 = arith.constant 0 : index
    %19 = vector.load %arg2[%c1_27, %c0_28, %c0_29] : memref<9x128x128xbf16, #tpu.memory_space<vmem>>, vector<1x128x128xbf16>
    %20 = vector.shape_cast %19 : vector<1x128x128xbf16> to vector<128x128xbf16>
    %cst_30 = arith.constant dense<0.000000e+00> : vector<64x128xf32>
    %21 = tpu.matmul %17, %20, %cst_30 {dimension_numbers = #tpu.dot_dimension_numbers<[1], [0], [0], [1], [0, 0, 1, 1], [], []>} : vector<64x128xbf16>, vector<128x128xbf16>, vector<64x128xf32> -> vector<64x128xf32>
    %22 = arith.addf %18, %21 : vector<64x128xf32>
    %c0_31 = arith.constant 0 : index
    %c0_32 = arith.constant 0 : index
    %23 = vector.load %arg6[%c0_31, %c0_32] : memref<64x128xf32, #tpu.memory_space<vmem>>, vector<64x128xf32>
    tpu.vector_store %arg6[%c0_31, %c0_32], %22 {strides = array<i32>} : memref<64x128xf32, #tpu.memory_space<vmem>>, vector<64x128xf32>,
    %c0_33 = arith.constant 0 : index
    %c2 = arith.constant 2 : index
    %c0_34 = arith.constant 0 : index
    %24 = vector.load %arg5[%c0_33, %c2, %c0_34] : memref<10x10x128xbf16, #tpu.memory_space<vmem>>, vector<8x8x128xbf16>
    %25 = vector.shape_cast %24 : vector<8x8x128xbf16> to vector<64x128xbf16>
    %c0_35 = arith.constant 0 : index
    %c0_36 = arith.constant 0 : index
    %26 = vector.load %arg6[%c0_35, %c0_36] : memref<64x128xf32, #tpu.memory_space<vmem>>, vector<64x128xf32>
    %c2_37 = arith.constant 2 : index
    %c0_38 = arith.constant 0 : index
    %c0_39 = arith.constant 0 : index
    %27 = vector.load %arg2[%c2_37, %c0_38, %c0_39] : memref<9x128x128xbf16, #tpu.memory_space<vmem>>, vector<1x128x128xbf16>
    %28 = vector.shape_cast %27 : vector<1x128x128xbf16> to vector<128x128xbf16>
    %cst_40 = arith.constant dense<0.000000e+00> : vector<64x128xf32>
    %29 = tpu.matmul %25, %28, %cst_40 {dimension_numbers = #tpu.dot_dimension_numbers<[1], [0], [0], [1], [0, 0, 1, 1], [], []>} : vector<64x128xbf16>, vector<128x128xbf16>, vector<64x128xf32> -> vector<64x128xf32>
    %30 = arith.addf %26, %29 : vector<64x128xf32>
    %c0_41 = arith.constant 0 : index
    %c0_42 = arith.constant 0 : index
    %31 = vector.load %arg6[%c0_41, %c0_42] : memref<64x128xf32, #tpu.memory_space<vmem>>, vector<64x128xf32>
    tpu.vector_store %arg6[%c0_41, %c0_42], %30 {strides = array<i32>} : memref<64x128xf32, #tpu.memory_space<vmem>>, vector<64x128xf32>,
    %c1_43 = arith.constant 1 : index
    %c0_44 = arith.constant 0 : index
    %c0_45 = arith.constant 0 : index
    %32 = vector.load %arg5[%c1_43, %c0_44, %c0_45] : memref<10x10x128xbf16, #tpu.memory_space<vmem>>, vector<8x8x128xbf16>
    %33 = vector.shape_cast %32 : vector<8x8x128xbf16> to vector<64x128xbf16>
    %c0_46 = arith.constant 0 : index
    %c0_47 = arith.constant 0 : index
    %34 = vector.load %arg6[%c0_46, %c0_47] : memref<64x128xf32, #tpu.memory_space<vmem>>, vector<64x128xf32>
    %c3 = arith.constant 3 : index
    %c0_48 = arith.constant 0 : index
    %c0_49 = arith.constant 0 : index
    %35 = vector.load %arg2[%c3, %c0_48, %c0_49] : memref<9x128x128xbf16, #tpu.memory_space<vmem>>, vector<1x128x128xbf16>
    %36 = vector.shape_cast %35 : vector<1x128x128xbf16> to vector<128x128xbf16>
    %cst_50 = arith.constant dense<0.000000e+00> : vector<64x128xf32>
    %37 = tpu.matmul %33, %36, %cst_50 {dimension_numbers = #tpu.dot_dimension_numbers<[1], [0], [0], [1], [0, 0, 1, 1], [], []>} : vector<64x128xbf16>, vector<128x128xbf16>, vector<64x128xf32> -> vector<64x128xf32>
    %38 = arith.addf %34, %37 : vector<64x128xf32>
    %c0_51 = arith.constant 0 : index
    %c0_52 = arith.constant 0 : index
    %39 = vector.load %arg6[%c0_51, %c0_52] : memref<64x128xf32, #tpu.memory_space<vmem>>, vector<64x128xf32>
    tpu.vector_store %arg6[%c0_51, %c0_52], %38 {strides = array<i32>} : memref<64x128xf32, #tpu.memory_space<vmem>>, vector<64x128xf32>,
    %c1_53 = arith.constant 1 : index
    %c1_54 = arith.constant 1 : index
    %c0_55 = arith.constant 0 : index
    %40 = vector.load %arg5[%c1_53, %c1_54, %c0_55] : memref<10x10x128xbf16, #tpu.memory_space<vmem>>, vector<8x8x128xbf16>
    %41 = vector.shape_cast %40 : vector<8x8x128xbf16> to vector<64x128xbf16>
    %c0_56 = arith.constant 0 : index
    %c0_57 = arith.constant 0 : index
    %42 = vector.load %arg6[%c0_56, %c0_57] : memref<64x128xf32, #tpu.memory_space<vmem>>, vector<64x128xf32>
    %c4 = arith.constant 4 : index
    %c0_58 = arith.constant 0 : index
    %c0_59 = arith.constant 0 : index
    %43 = vector.load %arg2[%c4, %c0_58, %c0_59] : memref<9x128x128xbf16, #tpu.memory_space<vmem>>, vector<1x128x128xbf16>
    %44 = vector.shape_cast %43 : vector<1x128x128xbf16> to vector<128x128xbf16>
    %cst_60 = arith.constant dense<0.000000e+00> : vector<64x128xf32>
    %45 = tpu.matmul %41, %44, %cst_60 {dimension_numbers = #tpu.dot_dimension_numbers<[1], [0], [0], [1], [0, 0, 1, 1], [], []>} : vector<64x128xbf16>, vector<128x128xbf16>, vector<64x128xf32> -> vector<64x128xf32>
    %46 = arith.addf %42, %45 : vector<64x128xf32>
    %c0_61 = arith.constant 0 : index
    %c0_62 = arith.constant 0 : index
    %47 = vector.load %arg6[%c0_61, %c0_62] : memref<64x128xf32, #tpu.memory_space<vmem>>, vector<64x128xf32>
    tpu.vector_store %arg6[%c0_61, %c0_62], %46 {strides = array<i32>} : memref<64x128xf32, #tpu.memory_space<vmem>>, vector<64x128xf32>,
    %c1_63 = arith.constant 1 : index
    %c2_64 = arith.constant 2 : index
    %c0_65 = arith.constant 0 : index
    %48 = vector.load %arg5[%c1_63, %c2_64, %c0_65] : memref<10x10x128xbf16, #tpu.memory_space<vmem>>, vector<8x8x128xbf16>
    %49 = vector.shape_cast %48 : vector<8x8x128xbf16> to vector<64x128xbf16>
    %c0_66 = arith.constant 0 : index
    %c0_67 = arith.constant 0 : index
    %50 = vector.load %arg6[%c0_66, %c0_67] : memref<64x128xf32, #tpu.memory_space<vmem>>, vector<64x128xf32>
    %c5 = arith.constant 5 : index
    %c0_68 = arith.constant 0 : index
    %c0_69 = arith.constant 0 : index
    %51 = vector.load %arg2[%c5, %c0_68, %c0_69] : memref<9x128x128xbf16, #tpu.memory_space<vmem>>, vector<1x128x128xbf16>
    %52 = vector.shape_cast %51 : vector<1x128x128xbf16> to vector<128x128xbf16>
    %cst_70 = arith.constant dense<0.000000e+00> : vector<64x128xf32>
    %53 = tpu.matmul %49, %52, %cst_70 {dimension_numbers = #tpu.dot_dimension_numbers<[1], [0], [0], [1], [0, 0, 1, 1], [], []>} : vector<64x128xbf16>, vector<128x128xbf16>, vector<64x128xf32> -> vector<64x128xf32>
    %54 = arith.addf %50, %53 : vector<64x128xf32>
    %c0_71 = arith.constant 0 : index
    %c0_72 = arith.constant 0 : index
    %55 = vector.load %arg6[%c0_71, %c0_72] : memref<64x128xf32, #tpu.memory_space<vmem>>, vector<64x128xf32>
    tpu.vector_store %arg6[%c0_71, %c0_72], %54 {strides = array<i32>} : memref<64x128xf32, #tpu.memory_space<vmem>>, vector<64x128xf32>,
    %c2_73 = arith.constant 2 : index
    %c0_74 = arith.constant 0 : index
    %c0_75 = arith.constant 0 : index
    %56 = vector.load %arg5[%c2_73, %c0_74, %c0_75] : memref<10x10x128xbf16, #tpu.memory_space<vmem>>, vector<8x8x128xbf16>
    %57 = vector.shape_cast %56 : vector<8x8x128xbf16> to vector<64x128xbf16>
    %c0_76 = arith.constant 0 : index
    %c0_77 = arith.constant 0 : index
    %58 = vector.load %arg6[%c0_76, %c0_77] : memref<64x128xf32, #tpu.memory_space<vmem>>, vector<64x128xf32>
    %c6 = arith.constant 6 : index
    %c0_78 = arith.constant 0 : index
    %c0_79 = arith.constant 0 : index
    %59 = vector.load %arg2[%c6, %c0_78, %c0_79] : memref<9x128x128xbf16, #tpu.memory_space<vmem>>, vector<1x128x128xbf16>
    %60 = vector.shape_cast %59 : vector<1x128x128xbf16> to vector<128x128xbf16>
    %cst_80 = arith.constant dense<0.000000e+00> : vector<64x128xf32>
    %61 = tpu.matmul %57, %60, %cst_80 {dimension_numbers = #tpu.dot_dimension_numbers<[1], [0], [0], [1], [0, 0, 1, 1], [], []>} : vector<64x128xbf16>, vector<128x128xbf16>, vector<64x128xf32> -> vector<64x128xf32>
    %62 = arith.addf %58, %61 : vector<64x128xf32>
    %c0_81 = arith.constant 0 : index
    %c0_82 = arith.constant 0 : index
    %63 = vector.load %arg6[%c0_81, %c0_82] : memref<64x128xf32, #tpu.memory_space<vmem>>, vector<64x128xf32>
    tpu.vector_store %arg6[%c0_81, %c0_82], %62 {strides = array<i32>} : memref<64x128xf32, #tpu.memory_space<vmem>>, vector<64x128xf32>,
    %c2_83 = arith.constant 2 : index
    %c1_84 = arith.constant 1 : index
    %c0_85 = arith.constant 0 : index
    %64 = vector.load %arg5[%c2_83, %c1_84, %c0_85] : memref<10x10x128xbf16, #tpu.memory_space<vmem>>, vector<8x8x128xbf16>
    %65 = vector.shape_cast %64 : vector<8x8x128xbf16> to vector<64x128xbf16>
    %c0_86 = arith.constant 0 : index
    %c0_87 = arith.constant 0 : index
    %66 = vector.load %arg6[%c0_86, %c0_87] : memref<64x128xf32, #tpu.memory_space<vmem>>, vector<64x128xf32>
    %c7 = arith.constant 7 : index
    %c0_88 = arith.constant 0 : index
    %c0_89 = arith.constant 0 : index
    %67 = vector.load %arg2[%c7, %c0_88, %c0_89] : memref<9x128x128xbf16, #tpu.memory_space<vmem>>, vector<1x128x128xbf16>
    %68 = vector.shape_cast %67 : vector<1x128x128xbf16> to vector<128x128xbf16>
    %cst_90 = arith.constant dense<0.000000e+00> : vector<64x128xf32>
    %69 = tpu.matmul %65, %68, %cst_90 {dimension_numbers = #tpu.dot_dimension_numbers<[1], [0], [0], [1], [0, 0, 1, 1], [], []>} : vector<64x128xbf16>, vector<128x128xbf16>, vector<64x128xf32> -> vector<64x128xf32>
    %70 = arith.addf %66, %69 : vector<64x128xf32>
    %c0_91 = arith.constant 0 : index
    %c0_92 = arith.constant 0 : index
    %71 = vector.load %arg6[%c0_91, %c0_92] : memref<64x128xf32, #tpu.memory_space<vmem>>, vector<64x128xf32>
    tpu.vector_store %arg6[%c0_91, %c0_92], %70 {strides = array<i32>} : memref<64x128xf32, #tpu.memory_space<vmem>>, vector<64x128xf32>,
    %c2_93 = arith.constant 2 : index
    %c2_94 = arith.constant 2 : index
    %c0_95 = arith.constant 0 : index
    %72 = vector.load %arg5[%c2_93, %c2_94, %c0_95] : memref<10x10x128xbf16, #tpu.memory_space<vmem>>, vector<8x8x128xbf16>
    %73 = vector.shape_cast %72 : vector<8x8x128xbf16> to vector<64x128xbf16>
    %c0_96 = arith.constant 0 : index
    %c0_97 = arith.constant 0 : index
    %74 = vector.load %arg6[%c0_96, %c0_97] : memref<64x128xf32, #tpu.memory_space<vmem>>, vector<64x128xf32>
    %c8 = arith.constant 8 : index
    %c0_98 = arith.constant 0 : index
    %c0_99 = arith.constant 0 : index
    %75 = vector.load %arg2[%c8, %c0_98, %c0_99] : memref<9x128x128xbf16, #tpu.memory_space<vmem>>, vector<1x128x128xbf16>
    %76 = vector.shape_cast %75 : vector<1x128x128xbf16> to vector<128x128xbf16>
    %cst_100 = arith.constant dense<0.000000e+00> : vector<64x128xf32>
    %77 = tpu.matmul %73, %76, %cst_100 {dimension_numbers = #tpu.dot_dimension_numbers<[1], [0], [0], [1], [0, 0, 1, 1], [], []>} : vector<64x128xbf16>, vector<128x128xbf16>, vector<64x128xf32> -> vector<64x128xf32>
    %78 = arith.addf %74, %77 : vector<64x128xf32>
    %c0_101 = arith.constant 0 : index
    %c0_102 = arith.constant 0 : index
    %79 = vector.load %arg6[%c0_101, %c0_102] : memref<64x128xf32, #tpu.memory_space<vmem>>, vector<64x128xf32>
    tpu.vector_store %arg6[%c0_101, %c0_102], %78 {strides = array<i32>} : memref<64x128xf32, #tpu.memory_space<vmem>>, vector<64x128xf32>,
    %c0_103 = arith.constant 0 : index
    %c0_104 = arith.constant 0 : index
    %80 = vector.load %arg6[%c0_103, %c0_104] : memref<64x128xf32, #tpu.memory_space<vmem>>, vector<64x128xf32>
    %c0_105 = arith.constant 0 : index
    %c0_106 = arith.constant 0 : index
    %81 = vector.load %arg3[%c0_105, %c0_106] : memref<1x128xf32, #tpu.memory_space<vmem>>, vector<1x128xf32>
    %82 = vector.broadcast %81 : vector<1x128xf32> to vector<64x128xf32>
    %83 = arith.addf %80, %82 : vector<64x128xf32>
    %c0_107 = arith.constant 0 : index
    %c0_108 = arith.constant 0 : index
    %c0_109 = arith.constant 0 : index
    %84 = vector.load %arg4[%c0_107, %c0_108, %c0_109] : memref<1x64x128xf32, #tpu.memory_space<vmem>>, vector<1x64x128xf32>
    %85 = vector.shape_cast %84 : vector<1x64x128xf32> to vector<64x128xf32>
    %86 = vector.shape_cast %83 : vector<64x128xf32> to vector<1x64x128xf32>
    tpu.vector_store %arg4[%c0_107, %c0_108, %c0_109], %86 {strides = array<i32>} : memref<1x64x128xf32, #tpu.memory_space<vmem>>, vector<1x64x128xf32>,
    return
  }
  func.func @transform_0(%arg0: i32) -> (i32, i32, i32, i32) {
    %c0_i32 = arith.constant 0 : i32
    %c0_i32_0 = arith.constant 0 : i32
    %c0_i32_1 = arith.constant 0 : i32
    %c0_i32_2 = arith.constant 0 : i32
    return %arg0, %c0_i32, %c0_i32_0, %c0_i32_1 : i32, i32, i32, i32
  }
  func.func @transform_1(%arg0: i32) -> (i32, i32, i32) {
    %c0_i32 = arith.constant 0 : i32
    %c0_i32_0 = arith.constant 0 : i32
    %c0_i32_1 = arith.constant 0 : i32
    %c0_i32_2 = arith.constant 0 : i32
    return %c0_i32, %c0_i32_0, %c0_i32_1 : i32, i32, i32
  }
  func.func @transform_2(%arg0: i32) -> (i32, i32) {
    %c0_i32 = arith.constant 0 : i32
    %c0_i32_0 = arith.constant 0 : i32
    %c0_i32_1 = arith.constant 0 : i32
    return %c0_i32, %c0_i32_0 : i32, i32
  }
  func.func @transform_3(%arg0: i32) -> (i32, i32, i32) {
    %c0_i32 = arith.constant 0 : i32
    %c0_i32_0 = arith.constant 0 : i32
    %c0_i32_1 = arith.constant 0 : i32
    return %arg0, %c0_i32, %c0_i32_0 : i32, i32, i32
  }
}

</mosaic_0001>

<bundles_post_ra>
// kernel: tpu_custom_call.1
= control target key start
LH: loop header
LB: loop body
LE: loop exit
PB: predicated region body
PF: predicated region fallthrough
CT: control target
= control target key end

     0   :  { %8 = vsyncpa [#allocation5], 0  ;;  %s3976_s0 = inlined_call_operand.hbm [shape: f32[2,8,8,32], index: 0, kind: input, shape index: {}]   ;;  %s3977_s1 = inlined_call_operand.hbm [shape: bf16[9,128,128], index: 1, kind: input, shape index: {}]   ;;  %s3978_s2 = inlined_call_operand.vmem [shape: f32[1,128], index: 2, kind: input, shape index: {}]   ;;  %s3979_s3 = inlined_call_operand.hbm [shape: f32[2,64,128], index: 3, kind: output, shape index: {}]  }
   0x1   :  { %10 = vsyncpa [#allocation5 + $0x1], 0 }
   0x2   :  { %11 = vsyncpa [#allocation8], 0 }
   0x3   :  { %12 = vsyncpa [#allocation6], 0 }
   0x4   :  { %14 = vsyncpa [#allocation6 + $0x1], 0  ;;  %s3575_s12 = smov 0   ;;  %s3577_s13 = smov 0  }
   0x5   :  { %s3579_s14 = smov 0   ;;  %s3581_s15 = smov 0  }
   0x6 LB: > { %s3596_s16 = sadd.s32 4294967295, %s3543_s15   ;;  %s2696_s17 = sadd.s32 4294967294, %s3543_s15   ;;  %s3543_s15 = sphi %s3581_s15, %s4007_s15   ;;  %s3539_s14 = sphi %s3579_s14, %s4006_s14   ;;  %s3535_s13 = sphi %s3577_s13, %s4005_s13   ;;  %s3531_s12 = sphi %s3575_s12, %s4004_s12  }
   0x7   : > { %p40_p0 = scmp.ne.s32.totalorder %s3535_s13, %s3531_s12  ;;  %p3980_p1 = scmp.eq.s32.totalorder %s3596_s16, 0 }
   0x8   : > { %p112_p3 = scmp.eq.s32.totalorder %s2696_s17, 1  ;;  %p2697_p5 = scmp.ge.s32.totalorder %s3543_s15, 1 }
   0x9   : > { %p3605_p4 = por %p3980_p1, %p40_p0  ;;  %p119_p7 = scmp.lt.s32.totalorder %s3543_s15, 3 }
   0xa   : > { %p3610_p6 = por %p112_p3, %p40_p0  ;;  %s3545_s21 = smov [#allocation7]  }
   0xb   : > { %s3983_s18 = scalar_select %p3605_p4, 1, 0 }
   0xc   : > { %s3984_s19 = scalar_select %p3610_p6, 1, 0 }
   0xd   : > { %p3615_p8 = pnand %p2697_p5, %p119_p7  ;;  %s131_s22 = sshll.u32 %s3545_s21, 4  ;;  %s3619_s22 = int_to_ptr.vmem [resolvable:$true] %s131_s22 }
   0xe   : > { %s3631_s24 = sadd.s32 1, %s3543_s15   ;;  %s27_s25 = sadd.s32 1, %s3539_s14 }
   0xf   : > { %s3985_s20 = scalar_select %p3615_p8, 1, 0 }
  0x10   : > { %p3275_p9 = pneg %p3615_p8  ;;  %s24_s26 = ssub.s32 %s3543_s15, %s3631_s24 }
  0x11   : > { %s3415_s29 = scalar_lea.hbm %s3977_s1, 9216 }
  0x12   : > { %p3626_p11 = pnand %p3275_p9, %p3980_p1  ;;  %p3416_p12 = scmp.ne.s32.totalorder %s3977_s1, %s3415_s29 }
  0x13   : > { %p3422_p5 = scmp.lt.u32.totalorder %s3415_s29, %s3977_s1 }
  0x14   : > { %p3417_p13 = pneg %p3626_p11 }
  0x16   : > { %p3418_p0 = pnand %p3417_p13, %p3416_p12 }
  0x18   : > { %p3419_p3 = pneg %p3418_p0 }
  0x1a   : > { %p3424_p7 = pnand %p3422_p5, %p3419_p3 }
  0x1c   : > { %3427 = shalt.err (!%p3424_p7)
}
  0x1d   : > { %s3428_s7 = scalar_lea.vmem %s3619_s22, 9216  ;;  %p3436_p2 = scmp.lt.s32.totalorder %s3619_s22, %s3619_s22 }
  0x1e   : > { %p3429_p9 = scmp.ne.s32.totalorder %s3619_s22, %s3428_s7  ;;  %p3437_p6 = scmp.lt.s32.totalorder %s3428_s7, %s3428_s7 }
  0x20   : > { %p3431_p10 = pnand %p3429_p9, %p3417_p13  ;;  %p3438_p4 = por %p3437_p6, %p3436_p2 }
  0x22   : > { %p3432_p1 = pneg %p3431_p10 }
  0x24   : > { %p3439_p8 = pnand %p3438_p4, %p3432_p1 }
  0x26   : > { %3442 = shalt.err (!%p3439_p8)
}
  0x27   : > { %s3546_s8 = smov 64   ;;  %s3547_s9 = smov 4  }
  0x28   : > { %3278 = dma.hbm_to_vmem [thread:$0]  (!%p3626_p11), %s3977_s1, 9216, %s3619_s22, [#allocation8], %s3546_s8, %s3546_s8, %s3547_s9  }
  0x29   : > { %p25_p2 = scmp.eq.s32.totalorder %s24_s26, 0  ;;  %p34_p1 = scmp.ne.s32.totalorder %s3539_s14, %s3535_s13 }
  0x2a   : > { %p35_p4 = scmp.eq.s32.totalorder %s3543_s15, 0  ;;  %p3288_p6 = scmp.lt.s32.totalorder %s3543_s15, 2 }
  0x2b   : > { %s3662_s17 = scalar_select %p25_p2, %s3539_s14, %s27_s25  }
  0x2c   : > { %p36_p8 = por %p35_p4, %p34_p1  ;;  %p3987_p10 = scmp.eq.s32.totalorder %s3596_s16, 1 }
  0x2d   : > { %s148_s27 = sand.u32 1, %s3539_s14   ;;  %s2853_s28 = sshll.u32 %s3543_s15, 10 }
  0x2e   : > { %p3666_p12 = por %p3987_p10, %p34_p1  ;;  %s2700_s29 = sshll.u32 %s148_s27, 6 }
  0x2f   : > { %s3675_s4 = scalar_lea.hbm %s3976_s0, %s2853_s28  ;;  %s152_s22 = scalar_lea.vmem [#allocation4], %s2700_s29 }
  0x30   : > { %s159_s25 = sshll.u32 %s152_s22, 4  ;;  %p3677_p11 = pnand %p3288_p6, %p36_p8  ;;  %s3681_s25 = int_to_ptr.vmem [resolvable:$true] %s159_s25 }
  0x31   : > { %s3683_s5 = scalar_lea.sflag [#allocation5], %s148_s27  ;;  %s3443_s6 = scalar_lea.hbm %s3675_s4, 1024 }
  0x32   : > { %p3444_p13 = scmp.ne.s32.totalorder %s3675_s4, %s3443_s6  ;;  %p3445_p0 = pneg %p3677_p11 }
  0x33   : > { %s3448_s9 = scalar_lea.hbm %s3976_s0, 2048  ;;  %p3449_p7 = scmp.lt.u32.totalorder %s3675_s4, %s3976_s0 }
  0x34   : > { %p3446_p3 = pnand %p3445_p0, %p3444_p13  ;;  %p3450_p9 = scmp.lt.u32.totalorder %s3448_s9, %s3443_s6 }
  0x35   : > { %p3452_p1 = scmp.lt.u32.totalorder %s3443_s6, %s3675_s4 }
  0x36   : > { %p3447_p5 = pneg %p3446_p3  ;;  %p3451_p2 = por %p3450_p9, %p3449_p7 }
  0x38   : > { %p3453_p4 = por %p3452_p1, %p3451_p2 }
  0x3a   : > { %p3454_p6 = pnand %p3453_p4, %p3447_p5 }
  0x3c   : > { %3457 = shalt.err (!%p3454_p6)
}
  0x3d   : > { %s3458_s27 = scalar_lea.vmem %s3681_s25, 1024  ;;  %s3548_s28 = smov [#allocation4]  }
  0x3e   : > { %p3459_p8 = scmp.ne.s32.totalorder %s3681_s25, %s3458_s27  ;;  %s3463_s29 = sshll.u32 %s3548_s28, 4  ;;  %s3464_s29 = int_to_ptr.vmem [resolvable:$false] %s3463_s29 }
  0x3f   : > { %s3465_s23 = scalar_lea.vmem %s3464_s29, 2048  ;;  %p3466_p3 = scmp.lt.s32.totalorder %s3681_s25, %s3464_s29 }
  0x40   : > { %p3461_p10 = pnand %p3459_p8, %p3445_p0  ;;  %p3467_p7 = scmp.lt.s32.totalorder %s3465_s23, %s3458_s27 }
  0x42   : > { %p3462_p13 = pneg %p3461_p10  ;;  %p3468_p9 = por %p3467_p7, %p3466_p3 }
  0x44   : > { %p3469_p2 = pnand %p3468_p9, %p3462_p13 }
  0x46   : > { %3472 = shalt.err (!%p3469_p2)
}
  0x47   : > { %s3549_s30 = smov 128   ;;  %s3550_s22 = smov 8  }
  0x48   : > { %3282 = dma.hbm_to_vmem [thread:$0]  (!%p3677_p11), %s3675_s4, 1024, %s3681_s25, %s3683_s5, %s3549_s30, %s3549_s30, %s3550_s22  }
  0x49   : > { %p3990_p0 = scmp.ne.s32.totalorder %s3985_s20, 0 }
  0x4a   : > { %s3714_s6 = sand.u32 (!%p3990_p0), 1, %s3535_s13   ;;  %p3991_p5 = scmp.ne.s32.totalorder (!%p3990_p0), %s3983_s18, 0 }
  0x4b   : > { %171 = sbr.rel (%p3990_p0) target bundleno = 491 (0x1eb), region = 32  ;;  %s2704_s7 = sshll.u32 (!%p3990_p0), %s3714_s6, 6 }
  0x4c   : > { %s174_s8 = scalar_lea.sflag (!%p3990_p0), [#allocation5], %s3714_s6  ;;  %s3720_s9 = scalar_lea.vmem (!%p3990_p0), [#allocation4], %s2704_s7 }
  0x52   : > { %3518 = dma.done.wait (%p3991_p5), %s174_s8, 1024  }
  0x53   : > { %3520 = vsyncadd (%p3991_p5), %s174_s8, 4294966272  ;;  %p3992_p11 = scmp.eq.s32.totalorder %s3596_s16, 0 }
  0x55   : > { %3522 = dma.done.wait (%p3992_p11), [#allocation8], 9216   ;;  %p3993_p1 = pmov %p3992_p11 }
  0x56   : > { %v3551_v0 = vmov 0   ;;  %v3331_v1 = vld [vmem:[#allocation7] sm:$0xff]   ;;  %v3333_v3 = vld [vmem:[#allocation7 + $0x8] sm:$0xff]   ;;  %v3335_v5 = vld [vmem:[#allocation7 + $0x10] sm:$0xff]   ;;  %vm346_vm0 = vcmask 257024   ;;  %vm352_vm2 = vcmask 253952  }
  0x57   : > { %3524 = vsyncadd (%p3993_p1), [#allocation8], 4294958080  ;;  %205 = vst [vmem:[#allocation2] sm:$0xf] %v3551_v0  ;;  %v3332_v2 = vld [vmem:[#allocation7 + $0x100] sm:$0xff]   ;;  %2971 = vmatprep.subr.bf16.mxu1 %v3331_v1  ;;  %v3334_v4 = vld [vmem:[#allocation7 + $0x108] sm:$0xff]  }
  0x58   : > { %207 = vst [vmem:[#allocation2 + $0x8] sm:$0xf] %v3551_v0  ;;  %206 = vst [vmem:[#allocation2 + $0x4] sm:$0x1] %v3551_v0  ;;  %3067 = vmatprep.subr.bf16.mxu0 %v3332_v2  ;;  %2972 = vmatpush3.bf16.msra.mxu1 %v3331_v1  ;;  %v3336_v6 = vld [vmem:[#allocation7 + $0x110] sm:$0xff]   ;;  %v3337_v7 = vld [vmem:[#allocation7 + $0x18] sm:$0xff]  }
  0x59   : > { %208 = vst [vmem:[#allocation2 + $0xc] sm:$0x1] %v3551_v0  ;;  %209 = vst [vmem:[#allocation2 + $0x10] sm:$0xf] %v3551_v0  ;;  %3068 = vmatpush3.bf16.msra.mxu0 %v3332_v2  ;;  %2973 = vmatprep.subr.bf16.mxu1 %v3333_v3  ;;  %v3338_v8 = vld [vmem:[#allocation7 + $0x118] sm:$0xff]   ;;  %v3339_v9 = vld [vmem:[#allocation7 + $0x20] sm:$0xff]  }
  0x5a   : > { %210 = vst [vmem:[#allocation2 + $0x14] sm:$0x1] %v3551_v0  ;;  %211 = vst [vmem:[#allocation2 + $0x18] sm:$0xf] %v3551_v0  ;;  %3069 = vmatprep.subr.bf16.mxu0 %v3334_v4  ;;  %v3340_v10 = vld [vmem:[#allocation7 + $0x120] sm:$0xff]   ;;  %v3341_v11 = vld [vmem:[#allocation7 + $0x28] sm:$0xff]  }
  0x5b   : > { %212 = vst [vmem:[#allocation2 + $0x1c] sm:$0x1] %v3551_v0  ;;  %213 = vst [vmem:[#allocation2 + $0x20] sm:$0xf] %v3551_v0  ;;  %v225_v12 = vld [vmem:[%s3720_s9] sm:$0xff]  ;;  %v3342_v13 = vld [vmem:[#allocation7 + $0x128] sm:$0xff]  }
  0x5c   : > { %214 = vst [vmem:[#allocation2 + $0x24] sm:$0x1] %v3551_v0  ;;  %215 = vst [vmem:[#allocation2 + $0x28] sm:$0xf] %v3551_v0  ;;  %2974 = vmatpush3.bf16.msra.mxu1 %v3333_v3  ;;  %vm347_vm1 = vsmask.f32 7938  ;;  %v2854_v14 = vpack.c.bf16 %v225_v12, %v225_v12 }
  0x5d   : > { %216 = vst [vmem:[#allocation2 + $0x2c] sm:$0x1] %v3551_v0  ;;  %217 = vst [vmem:[#allocation2 + $0x30] sm:$0xf] %v3551_v0  ;;  %3070 = vmatpush3.bf16.msra.mxu0 %v3334_v4  ;;  %2975 = vmatprep.subr.bf16.mxu1 %v3335_v5  ;;  %v226_v15 = vld [vmem:[%s3720_s9 + $0x8] sm:$0xff]  ;;  %v3343_v16 = vld [vmem:[#allocation7 + $0x30] sm:$0xff]  }
  0x5e   : > { %218 = vst [vmem:[#allocation2 + $0x34] sm:$0x1] %v3551_v0  ;;  %219 = vst [vmem:[#allocation2 + $0x38] sm:$0xf] %v3551_v0  ;;  %3071 = vmatprep.subr.bf16.mxu0 %v3336_v6  ;;  %vm353_vm3 = vsmask.f32 256  ;;  %v2855_v20 = vpack.c.bf16 %v226_v15, %v226_v15 }
  0x5f   : > { %220 = vst [vmem:[#allocation2 + $0x3c] sm:$0x1] %v3551_v0  ;;  %221 = vst [vmem:[#allocation2 + $0x40] sm:$0xf] %v3551_v0  ;;  %v266_v17 = vshrl.u32 %v2854_v14, 16  ;;  %v269_v18 = vshll.u32 %v2854_v14, 16 }
  0x60   : > { %222 = vst [vmem:[#allocation2 + $0x44] sm:$0x1] %v3551_v0  ;;  %223 = vst [vmem:[#allocation2 + $0x48] sm:$0xf] %v3551_v0  ;;  %2976 = vmatpush3.bf16.msra.mxu1 %v3335_v5  ;;  %v3344_v21 = vld [vmem:[#allocation7 + $0x130] sm:$0xff]   ;;  %v274_v25 = vshrl.u32 %v2855_v20, 16 }
  0x61   : > { %224 = vst [vmem:[#allocation2 + $0x4c] sm:$0x1] %v3551_v0  ;;  %3072 = vmatpush3.bf16.msra.mxu0 %v3336_v6  ;;  %2977 = vmatprep.subr.bf16.mxu1 %v3337_v7  ;;  %vm3733_vm4 = vmand %vm346_vm0, %vm347_vm1  ;;  %v227_v22 = vld [vmem:[%s3720_s9 + $0x10] sm:$0xff]  ;;  %v268_v23 = vrot.slane %v266_v17, 7  ;;  %v349_v24 = vld [vmem:[#allocation2 + $0x8] sm:$0xf] }
  0x62   : > { %3073 = vmatprep.subr.bf16.mxu0 %v3338_v8  ;;  %v277_v26 = vshll.u32 %v2855_v20, 16  ;;  %vm3740_vm5 = vmand %vm352_vm2, %vm353_vm3  ;;  %v2856_v28 = vpack.c.bf16 %v227_v22, %v227_v22  ;;  %v228_v29 = vld [vmem:[%s3720_s9 + $0x18] sm:$0xff]  ;;  %v358_v31 = vld [vmem:[#allocation2 + $0x10] sm:$0xf]  ;;  %v276_v36 = vrot.slane %v274_v25, 7  ;;  %vm926_vm9 = vcmask 1042432  }
  0x63   : > { %v355_v30 = vld [vmem:[#allocation2 + $0xc] sm:$0x1]  ;;  %v361_v32 = vld [vmem:[#allocation2 + $0x14] sm:$0x1]  ;;  %v2857_v33 = vpack.c.bf16 %v228_v29, %v228_v29  ;;  %v271_v34 = vor.u32 %v269_v18, %v268_v23  ;;  %v272_v35 = vrot.slane %v268_v23, 4  ;;  %v3351_v14 = vld [vmem:[#allocation7 + $0x48] sm:$0xff]  }
  0x64   : > { %2978 = vmatpush3.bf16.msra.mxu1 %v3337_v7  ;;  %v282_v37 = vshrl.u32 %v2856_v28, 16  ;;  %v3345_v38 = vld [vmem:[#allocation7 + $0x38] sm:$0xff]   ;;  %v285_v39 = vshll.u32 %v2856_v28, 16  ;;  %v279_v44 = vor.u32 %v277_v26, %v276_v36  ;;  %v280_v45 = vrot.slane %v276_v36, 4  ;;  %v364_v47 = vld [vmem:[#allocation2 + $0x18] sm:$0xf] }
  0x65   : > { %3074 = vmatpush3.bf16.msra.mxu0 %v3338_v8  ;;  %2979 = vmatprep.subr.bf16.mxu1 %v3339_v9  ;;  %v290_v40 = vshrl.u32 %v2857_v33, 16  ;;  %v293_v41 = vshll.u32 %v2857_v33, 16  ;;  %v3346_v42 = vld [vmem:[#allocation7 + $0x138] sm:$0xff]   ;;  %v350_v43 = vsel %vm3733_vm4, %v271_v34, %v349_v24  ;;  %v356_v46 = vsel %vm3740_vm5, %v272_v35, %v355_v30  ;;  %v367_v48 = vld [vmem:[#allocation2 + $0x1c] sm:$0x1]  ;;  %v3749_v50 = vld [vmem:[#allocation7 + $0x40] sm:$0xff]  }
  0x66   : > { %3075 = vmatprep.subr.bf16.mxu0 %v3340_v10  ;;  %v370_v49 = vld [vmem:[#allocation2 + $0x20] sm:$0xf]  ;;  %351 = vst [vmem:[#allocation2 + $0x8] sm:$0xf] %v350_v43  ;;  %357 = vst [vmem:[#allocation2 + $0xc] sm:$0x1] %v356_v46  ;;  %v359_v53 = vsel %vm3733_vm4, %v279_v44, %v358_v31  ;;  %v362_v54 = vsel %vm3740_vm5, %v280_v45, %v361_v32 }
  0x67   : > { %v284_v51 = vrot.slane %v282_v37, 7  ;;  %v292_v52 = vrot.slane %v290_v40, 7  ;;  %v373_v55 = vld [vmem:[#allocation2 + $0x24] sm:$0x1]  ;;  %360 = vst [vmem:[#allocation2 + $0x10] sm:$0xf] %v359_v53 }
  0x68   : > { %2980 = vmatpush3.bf16.msra.mxu1 %v3339_v9  ;;  %363 = vst [vmem:[#allocation2 + $0x14] sm:$0x1] %v362_v54  ;;  %v3755_v60 = vld [vmem:[#allocation7 + $0x140] sm:$0xff]   ;;  %vm609_vm6 = vsmask.f32 3328  ;;  %vm927_vm10 = vcmask 1046532  }
  0x69   : > { %3076 = vmatpush3.bf16.msra.mxu0 %v3340_v10  ;;  %2981 = vmatprep.subr.bf16.mxu1 %v3341_v11  ;;  %v287_v56 = vor.u32 %v285_v39, %v284_v51  ;;  %v288_v57 = vrot.slane %v284_v51, 4  ;;  %v295_v58 = vor.u32 %v293_v41, %v292_v52  ;;  %v296_v59 = vrot.slane %v292_v52, 4  ;;  %v229_v9 = vld [vmem:[%s3720_s9 + $0x20] sm:$0xff]  ;;  %v230_v51 = vld [vmem:[%s3720_s9 + $0x28] sm:$0xff]  ;;  %vm3817_vm11 = vmor %vm926_vm9, %vm927_vm10  ;;  %s203_s4 = scalar_lea.vmem [#allocation9], %s2704_s7  ;;  %s2862_s26 = sshll.u32 %s3596_s16, 10 }
  0x6a   : > { %3077 = vmatprep.subr.bf16.mxu0 %v3342_v13  ;;  %vm610_vm7 = vsmask.f32 7440  ;;  %v2858_v17 = vpack.c.bf16 %v229_v9, %v229_v9  ;;  %s2613_s25 = sshll.u32 %s203_s4, 4  ;;  %s3932_s10 = scalar_lea.hbm %s3979_s3, %s2862_s26  ;;  %s3927_s25 = int_to_ptr.vmem [resolvable:$true] %s2613_s25 }
  0x6b   : > { %v365_v61 = vsel %vm3733_vm4, %v287_v56, %v364_v47  ;;  %v368_v62 = vsel %vm3740_vm5, %v288_v57, %v367_v48  ;;  %v371_v63 = vsel %vm3733_vm4, %v295_v58, %v370_v49  ;;  %v374_v0 = vsel %vm3740_vm5, %v296_v59, %v373_v55  ;;  %vm3770_vm8 = vmor %vm609_vm6, %vm610_vm7  ;;  %v376_v55 = vld [vmem:[#allocation2 + $0x28] sm:$0xf]  ;;  %v379_v57 = vld [vmem:[#allocation2 + $0x2c] sm:$0x1]  ;;  %s2600_s11 = scalar_lea.sflag [#allocation6], %s3714_s6  ;;  %s3473_s27 = scalar_lea.vmem %s3927_s25, 1024 }
  0x6c   : > { %2982 = vmatpush3.bf16.msra.mxu1 %v3341_v11  ;;  %366 = vst [vmem:[#allocation2 + $0x18] sm:$0xf] %v365_v61  ;;  %369 = vst [vmem:[#allocation2 + $0x1c] sm:$0x1] %v368_v62  ;;  %v298_v28 = vshrl.u32 %v2858_v17, 16  ;;  %v2859_v56 = vpack.c.bf16 %v230_v51, %v230_v51  ;;  %v3355_v58 = vld [vmem:[#allocation7 + $0x58] sm:$0xff]   ;;  %p3474_p4 = scmp.ne.s32.totalorder %s3927_s25, %s3473_s27 }
  0x6d   : > { %3078 = vmatpush3.bf16.msra.mxu0 %v3342_v13  ;;  %2983 = vmatprep.subr.bf16.mxu1 %v3343_v16  ;;  %372 = vst [vmem:[#allocation2 + $0x20] sm:$0xf] %v371_v63  ;;  %375 = vst [vmem:[#allocation2 + $0x24] sm:$0x1] %v374_v0  ;;  %v3347_v1 = vld [vmem:[#allocation2] ss:$8 sps:$4 sm:$0xff]  }
  0x6e   : > { %3079 = vmatprep.subr.bf16.mxu0 %v3344_v21  ;;  %v1317_v2 = vld [vmem:[#allocation2 + $0x8] sm:$0xf]  ;;  %v1318_v3 = vld [vmem:[#allocation2 + $0xc] sm:$0x1]  ;;  %2987 = vmatprep.mubr.bf16.mxu1 %v3347_v1  ;;  %v1319_v6 = vld [vmem:[#allocation2 + $0x10] sm:$0xf]  ;;  %p3475_p6 = pnand %p3474_p4, %p3666_p12 }
  0x6f   : > { %v1334_v4 = vshrl.u32 %v1317_v2, 16  ;;  %v1337_v5 = vshll.u32 %v1317_v2, 16  ;;  %v1320_v7 = vld [vmem:[#allocation2 + $0x14] sm:$0x1]  ;;  %v1343_v8 = vshll.u32 %v1318_v3, 16  ;;  %v1348_v12 = vshrl.u32 %v1319_v6, 16 }
  0x70   : > { %2984 = vmatpush3.bf16.msra.mxu1 %v3343_v16  ;;  %v1351_v13 = vshll.u32 %v1319_v6, 16  ;;  %v1357_v16 = vshll.u32 %v1320_v7, 16  ;;  %v300_v49 = vrot.slane %v298_v28, 7  ;;  %v306_v0 = vshrl.u32 %v2859_v56, 16  ;;  %v231_v2 = vld [vmem:[%s3720_s9 + $0x30] sm:$0xff]  ;;  %v232_v3 = vld [vmem:[%s3720_s9 + $0x38] sm:$0xff]  ;;  %p3476_p8 = pneg %p3475_p6 }
  0x71   : > { %3080 = vmatpush3.bf16.msra.mxu0 %v3344_v21  ;;  %2985 = vmatprep.subr.bf16.mxu1 %v3345_v38  ;;  %v1336_v10 = vrot.slane %v1334_v4, 4  ;;  %v1339_v11 = vrot.slane %v1337_v5, 5  ;;  %v1345_v15 = vrot.slane %v1343_v8, 5  ;;  %v1350_v20 = vrot.slane %v1348_v12, 4  ;;  %v382_v6 = vld [vmem:[#allocation2 + $0x30] sm:$0xf] }
  0x72   : > { %3081 = vmatprep.subr.bf16.mxu0 %v3346_v42  ;;  %v1353_v21 = vrot.slane %v1351_v13, 5  ;;  %v1359_v24 = vrot.slane %v1357_v16, 5  ;;  %v304_v61 = vrot.slane %v300_v49, 4  ;;  %v309_v1 = vshll.u32 %v2859_v56, 16  ;;  %v385_v13 = vld [vmem:[#allocation2 + $0x34] sm:$0x1] }
  0x73   : > { %v1340_v18 = vor.u32 %v1339_v11, %v1336_v10  ;;  %v3350_v22 = vld [vmem:[#allocation2 + $0x10] ss:$8 sps:$4 sm:$0xff]   ;;  %v1322_v26 = vld [vmem:[#allocation2 + $0x1c] sm:$0x1]  ;;  %v2860_v7 = vpack.c.bf16 %v231_v2, %v231_v2  ;;  %v2861_v8 = vpack.c.bf16 %v232_v3, %v232_v3  ;;  %v308_v12 = vrot.slane %v306_v0, 7  ;;  %v3790_v28 = vld [vmem:[#allocation7 + $0x150] sm:$0xff]  }
  0x74   : > { %2986 = vmatpush3.bf16.msra.mxu1 %v3345_v38  ;;  %v1321_v25 = vld [vmem:[#allocation2 + $0x18] sm:$0xf]  ;;  %v1354_v30 = vor.u32 %v1353_v21, %v1350_v20  ;;  %v1323_v31 = vld [vmem:[#allocation2 + $0x20] sm:$0xf]  ;;  %v1324_v32 = vld [vmem:[#allocation2 + $0x24] sm:$0x1]  ;;  %v380_v5 = vsel %vm3740_vm5, %v304_v61, %v379_v57 }
  0x75   : > { %3082 = vmatpush3.bf16.msra.mxu0 %v3346_v42  ;;  %2995 = vmatprep.subr.bf16.mxu1 %v3749_v50  ;;  %v1341_v29 = vrot.slane %v1340_v18, 4  ;;  %v1362_v33 = vshrl.u32 %v1321_v25, 16  ;;  %v1365_v34 = vshll.u32 %v1321_v25, 16  ;;  %v1371_v35 = vshll.u32 %v1322_v26, 16  ;;  %v3353_v42 = vld [vmem:[#allocation7 + $0x50] sm:$0xff]   ;;  %v3352_v11 = vld [vmem:[#allocation7 + $0x148] sm:$0xff]  }
  0x76   : > { %3091 = vmatprep.subr.bf16.mxu0 %v3755_v60  ;;  %v1376_v36 = vshrl.u32 %v1323_v31, 16  ;;  %v1379_v37 = vshll.u32 %v1323_v31, 16  ;;  %v1355_v39 = vrot.slane %v1354_v30, 4  ;;  %v1385_v41 = vshll.u32 %v1324_v32, 16  ;;  %381 = vst [vmem:[#allocation2 + $0x2c] sm:$0x1] %v380_v5 }
  0x77   : > { %2988 = vmatmul.mubr.bf16.vlgmr.msra.gmra.mrb[0].mxu1 %v3350_v22  ;;  %v1346_v38 = vsel %vm3770_vm8, %v1341_v29, %v1345_v15  ;;  %v1364_v40 = vrot.slane %v1362_v33, 4  ;;  %v1367_v43 = vrot.slane %v1365_v34, 5  ;;  %v1373_v44 = vrot.slane %v1371_v35, 5  ;;  %v3357_v15 = vld [vmem:[#allocation7 + $0x60] sm:$0xff]   ;;  %v388_v22 = vld [vmem:[#allocation2 + $0x38] sm:$0xf] }
  0x78   : > { %2996 = vmatpush3.bf16.msra.mxu1 %v3749_v50  ;;  %v1378_v45 = vrot.slane %v1376_v36, 4  ;;  %v1381_v46 = vrot.slane %v1379_v37, 5  ;;  %v1360_v47 = vsel %vm3770_vm8, %v1355_v39, %v1359_v24  ;;  %v1387_v48 = vrot.slane %v1385_v41, 5  ;;  %v391_v25 = vld [vmem:[#allocation2 + $0x3c] sm:$0x1]  ;;  %s3552_s28 = smov [#allocation9]  }
  0x79   : > { %2997 = vmatprep.subr.bf16.mxu1 %v3351_v14  ;;  %v301_v50 = vshll.u32 %v2858_v17, 16  ;;  %v2771_v52 = vcombine.low %v1346_v38, %v1360_v47  ;;  %v1368_v53 = vor.u32 %v1367_v43, %v1364_v40  ;;  %v314_v16 = vshrl.u32 %v2860_v7, 16  ;;  %v394_v26 = vld [vmem:[#allocation2 + $0x40] sm:$0xf]  ;;  %v3792_v29 = vld [vmem:[#allocation7 + $0x68] sm:$0xff]   ;;  %s3477_s29 = sshll.u32 %s3552_s28, 4  ;;  %s3478_s29 = int_to_ptr.vmem [resolvable:$false] %s3477_s29 }
  0x7a   : > { %v1382_v54 = vor.u32 %v1381_v46, %v1378_v45  ;;  %v317_v17 = vshll.u32 %v2860_v7, 16  ;;  %v322_v18 = vshrl.u32 %v2861_v8, 16  ;;  %v311_v20 = vor.u32 %v309_v1, %v308_v12  ;;  %v593_v32 = vld [vmem:[#allocation2] sm:$0xf]  ;;  %v594_v33 = vld [vmem:[#allocation2 + $0x4] sm:$0x1]  ;;  %p3480_p10 = scmp.lt.s32.totalorder %s3927_s25, %s3478_s29 }
  0x7b   : > { %v303_v59 = vor.u32 %v301_v50, %v300_v49  ;;  %3083 = vmatprep.mubr.bf16.mxu0 %v2771_v52  ;;  %v1369_v62 = vrot.slane %v1368_v53, 4  ;;  %v312_v21 = vrot.slane %v308_v12, 4  ;;  %v325_v24 = vshll.u32 %v2861_v8, 16  ;;  %v397_v36 = vld [vmem:[#allocation2 + $0x44] sm:$0x1]  ;;  %s3479_s23 = scalar_lea.vmem %s3478_s29, 2048 }
  0x7c   : > { %2998 = vmatpush3.bf16.msra.mxu1 %v3351_v14  ;;  %v1383_v63 = vrot.slane %v1382_v54, 4  ;;  %v316_v30 = vrot.slane %v314_v16, 7  ;;  %v324_v31 = vrot.slane %v322_v18, 7  ;;  %v383_v34 = vsel %vm3733_vm4, %v311_v20, %v382_v6  ;;  %v595_v37 = vld [vmem:[#allocation2 + $0x8] sm:$0xf]  ;;  %v3358_v6 = vld [vmem:[#allocation7 + $0x160] sm:$0xff]   ;;  %p3481_p13 = scmp.lt.s32.totalorder %s3479_s23, %s3473_s27 }
  0x7d   : > { %2999 = vmatprep.subr.bf16.mxu1 %v3353_v42  ;;  %v377_v4 = vsel %vm3733_vm4, %v303_v59, %v376_v55  ;;  %v1374_v9 = vsel %vm3770_vm8, %v1369_v62, %v1373_v44  ;;  %v386_v35 = vsel %vm3740_vm5, %v312_v21, %v385_v13  ;;  %v613_v38 = vshrl.u32 %v593_v32, 16  ;;  %384 = vst [vmem:[#allocation2 + $0x30] sm:$0xf] %v383_v34  ;;  %v3362_v55 = vld [vmem:[#allocation7 + $0x70] sm:$0xff]   ;;  %v1326_v56 = vld [vmem:[#allocation2 + $0x2c] sm:$0x1] }
  0x7e   : > { %v1388_v10 = vsel %vm3770_vm8, %v1383_v63, %v1387_v48  ;;  %378 = vst [vmem:[#allocation2 + $0x28] sm:$0xf] %v377_v4  ;;  %v616_v39 = vshll.u32 %v593_v32, 16  ;;  %387 = vst [vmem:[#allocation2 + $0x34] sm:$0x1] %v386_v35  ;;  %v319_v40 = vor.u32 %v317_v17, %v316_v30  ;;  %v320_v41 = vrot.slane %v316_v30, 4  ;;  %p3482_p3 = por %p3481_p13, %p3480_p10 }
  0x7f   : > { %v2772_v14 = vcombine.low %v1374_v9, %v1388_v10  ;;  %v328_v43 = vrot.slane %v324_v31, 4  ;;  %v615_v44 = vrot.slane %v613_v38, 4  ;;  %v622_v46 = vshll.u32 %v594_v33, 16  ;;  %v3356_v48 = vld [vmem:[#allocation7 + $0x158] sm:$0xff]   ;;  %v1617_v10 = vld [vmem:[#allocation2 + $0x10] sm:$0xe] }
  0x80   : > { %3000 = vmatpush3.bf16.msra.mxu1 %v3353_v42  ;;  %v327_v42 = vor.u32 %v325_v24, %v324_v31  ;;  %v618_v45 = vrot.slane %v616_v39, 5  ;;  %v627_v47 = vshrl.u32 %v595_v37, 16  ;;  %v389_v51 = vsel %vm3733_vm4, %v319_v40, %v388_v22  ;;  %v1615_v0 = vld [vmem:[#allocation2 + $0x8] sm:$0xe]  ;;  %v1616_v4 = vld [vmem:[#allocation2 + $0xc] sm:$0x1]  ;;  %p3483_p7 = pnand %p3482_p3, %p3476_p8 }
  0x81   : > { %3001 = vmatprep.subr.bf16.mxu1 %v3355_v58  ;;  %3084 = vmatmul.mubr.bf16.vlgmr.msra.gmra.mrb[0].mxu0 %v2772_v14  ;;  %v392_v52 = vsel %vm3740_vm5, %v320_v41, %v391_v25  ;;  %v398_v54 = vsel %vm3740_vm5, %v328_v43, %v397_v36  ;;  %390 = vst [vmem:[#allocation2 + $0x38] sm:$0xf] %v389_v51  ;;  %v3807_v61 = vrot.slane %v622_v46, 5  ;;  %v1399_v19 = vshll.u32 %v1326_v56, 16  ;;  %v3365_v18 = vld [vmem:[#allocation7 + $0x78] sm:$0xff]   ;;  %v3827_v38 = vld [vmem:[#allocation7 + $0x80] sm:$0xff]  }
  0x82   : > { %3092 = vmatpush3.bf16.msra.mxu0 %v3755_v60  ;;  %v596_v60 = vld [vmem:[#allocation2 + $0xc] sm:$0x1]  ;;  %v395_v53 = vsel %vm3733_vm4, %v327_v42, %v394_v26  ;;  %393 = vst [vmem:[#allocation2 + $0x3c] sm:$0x1] %v392_v52  ;;  %399 = vst [vmem:[#allocation2 + $0x44] sm:$0x1] %v398_v54  ;;  %v619_v59 = vor.u32 %v618_v45, %v615_v44 }
  0x83   : > { %3093 = vmatprep.subr.bf16.mxu0 %v3352_v11  ;;  %396 = vst [vmem:[#allocation2 + $0x40] sm:$0xf] %v395_v53  ;;  %v629_v27 = vrot.slane %v627_v47, 4  ;;  %v630_v62 = vshll.u32 %v595_v37, 16  ;;  %v636_v63 = vshll.u32 %v596_v60, 16  ;;  %v2783_v5 = vrot.slane %v1615_v0, 9 }
  0x84   : > { %3002 = vmatpush3.bf16.msra.mxu1 %v3355_v58  ;;  %v620_v3 = vrot.slane %v619_v59, 4  ;;  %v3811_v7 = vrot.slane %v1399_v19, 5  ;;  %v1327_v12 = vld [vmem:[#allocation2 + $0x30] sm:$0xf]  ;;  %v1618_v22 = vld [vmem:[#allocation2 + $0x14] sm:$0x1] }
  0x85   : > { %3003 = vmatprep.subr.bf16.mxu1 %v3357_v15  ;;  %v3361_v49 = vld [vmem:[#allocation2 + $0x20] ss:$8 sps:$4 sm:$0xff]   ;;  %v632_v8 = vrot.slane %v630_v62, 5  ;;  %v638_v9 = vrot.slane %v636_v63, 5  ;;  %v1328_v13 = vld [vmem:[#allocation2 + $0x34] sm:$0x1] }
  0x86   : > { %v1325_v50 = vld [vmem:[#allocation2 + $0x28] sm:$0xf]  ;;  %3094 = vmatpush3.bf16.msra.mxu0 %v3352_v11  ;;  %2991 = vmatprep.mubr.bf16.mxu1 %v3361_v49  ;;  %v1649_v11 = vrot.slane %v1616_v4, 5  ;;  %v1407_v16 = vshll.u32 %v1327_v12, 16  ;;  %v1413_v17 = vshll.u32 %v1328_v13, 16  ;;  %v625_v25 = vsel %vm3770_vm8, %v620_v3, %v3807_v61  ;;  %v3363_v19 = vld [vmem:[#allocation7 + $0x170] sm:$0xff]  }
  0x87   : > { %v1390_v57 = vshrl.u32 %v1325_v50, 16  ;;  %v1393_v58 = vshll.u32 %v1325_v50, 16  ;;  %3095 = vmatprep.subr.bf16.mxu0 %v3790_v28  ;;  %v633_v20 = vor.u32 %v632_v8, %v629_v27  ;;  %v2784_v26 = vrot.slane %v1617_v10, 9  ;;  %v597_v54 = vld [vmem:[#allocation2 + $0x10] sm:$0xf] }
  0x88   : > { %3004 = vmatpush3.bf16.msra.mxu1 %v3357_v15  ;;  %v1404_v15 = vshrl.u32 %v1327_v12, 16  ;;  %v1409_v31 = vrot.slane %v1407_v16, 5  ;;  %v1415_v32 = vrot.slane %v1413_v17, 5  ;;  %v3364_v35 = vld [vmem:[#allocation2 + $0x30] ss:$8 sps:$4 sm:$0xff]   ;;  %v3831_v39 = vsel %vm3817_vm11, %v2783_v5, %v1649_v11 }
  0x89   : > { %3005 = vmatprep.subr.bf16.mxu1 %v3792_v29  ;;  %v1392_v1 = vrot.slane %v1390_v57, 4  ;;  %v1395_v2 = vrot.slane %v1393_v58, 5  ;;  %v634_v33 = vrot.slane %v633_v20, 4  ;;  %v1329_v36 = vld [vmem:[#allocation2 + $0x38] sm:$0xf]  ;;  %2992 = vmatmul.mubr.bf16.gmra.mrb[4].mxu1 %v3364_v35  ;;  %v644_v4 = vshll.u32 %v597_v54, 16 }
  0x8a   : > { %3096 = vmatpush3.bf16.msra.mxu0 %v3790_v28  ;;  %v1653_v28 = vrot.slane %v1618_v22, 5  ;;  %v1406_v30 = vrot.slane %v1404_v15, 4  ;;  %v1330_v37 = vld [vmem:[#allocation2 + $0x3c] sm:$0x1]  ;;  %v1331_v42 = vld [vmem:[#allocation2 + $0x40] sm:$0xf] }
  0x8b   : > { %v1396_v14 = vor.u32 %v1395_v2, %v1392_v1  ;;  %3097 = vmatprep.subr.bf16.mxu0 %v3356_v48  ;;  %v1332_v43 = vld [vmem:[#allocation2 + $0x44] sm:$0x1]  ;;  %v1418_v60 = vshrl.u32 %v1329_v36, 16  ;;  %v1421_v44 = vshll.u32 %v1329_v36, 16  ;;  %v639_v45 = vsel %vm3770_vm8, %v634_v33, %v638_v9  ;;  %v598_v59 = vld [vmem:[#allocation2 + $0x14] sm:$0x1] }
  0x8c   : > { %3006 = vmatpush3.bf16.msra.mxu1 %v3792_v29  ;;  %v3360_v29 = vld [vmem:[#allocation7 + $0x168] sm:$0xff]   ;;  %v3835_v40 = vsel %vm3817_vm11, %v2784_v26, %v1653_v28  ;;  %v1410_v41 = vor.u32 %v1409_v31, %v1406_v30  ;;  %v1427_v46 = vshll.u32 %v1330_v37, 16  ;;  %v1432_v47 = vshrl.u32 %v1331_v42, 16  ;;  %v1621_v12 = vld [vmem:[#allocation2 + $0x20] sm:$0xe]  ;;  %v3366_v20 = vld [vmem:[#allocation7 + $0x178] sm:$0xff]  }
  0x8d   : > { %3007 = vmatprep.subr.bf16.mxu1 %v3362_v55  ;;  %v1397_v24 = vrot.slane %v1396_v14, 4  ;;  %v1441_v49 = vshll.u32 %v1332_v43, 16  ;;  %v1420_v51 = vrot.slane %v1418_v60, 4  ;;  %v1423_v52 = vrot.slane %v1421_v44, 5  ;;  %v599_v63 = vld [vmem:[#allocation2 + $0x18] sm:$0xf] }
  0x8e   : > { %3098 = vmatpush3.bf16.msra.mxu0 %v3356_v48  ;;  %v1435_v48 = vshll.u32 %v1331_v42, 16  ;;  %v1411_v50 = vrot.slane %v1410_v41, 4  ;;  %v2727_v53 = vcombine.low %v625_v25, %v639_v45  ;;  %v1434_v56 = vrot.slane %v1432_v47, 4  ;;  %v600_v0 = vld [vmem:[#allocation2 + $0x1c] sm:$0x1]  ;;  %v3368_v36 = vld [vmem:[#allocation7 + $0x180] sm:$0xff]  }
  0x8f   : > { %v1402_v34 = vsel %vm3770_vm8, %v1397_v24, %v3811_v7  ;;  %3099 = vmatprep.subr.bf16.mxu0 %v3358_v6  ;;  %v1443_v58 = vrot.slane %v1441_v49, 5  ;;  %v1424_v27 = vor.u32 %v1423_v52, %v1420_v51  ;;  %v2791_v62 = vcombine.low %v3831_v39, %v3835_v40  ;;  %v1620_v7 = vld [vmem:[#allocation2 + $0x1c] sm:$0x1]  ;;  %v1622_v17 = vld [vmem:[#allocation2 + $0x24] sm:$0x1] }
  0x90   : > { %3008 = vmatpush3.bf16.msra.mxu1 %v3362_v55  ;;  %v1429_v55 = vrot.slane %v1427_v46, 5  ;;  %v1437_v57 = vrot.slane %v1435_v48, 5  ;;  %v1416_v61 = vsel %vm3770_vm8, %v1411_v50, %v1415_v32  ;;  %3011 = vmatprep.mubr.bf16.mxu1 %v2727_v53  ;;  %v641_v1 = vshrl.u32 %v597_v54, 16  ;;  %v3369_v42 = vld [vmem:[#allocation7 + $0x88] sm:$0xff]   ;;  %v3371_v46 = vld [vmem:[#allocation7 + $0x90] sm:$0xff]  }
  0x91   : > { %3009 = vmatprep.subr.bf16.mxu1 %v3365_v18  ;;  %v2773_v2 = vcombine.low %v1402_v34, %v1416_v61  ;;  %v650_v5 = vshll.u32 %v598_v59, 16  ;;  %v1425_v8 = vrot.slane %v1424_v27, 4  ;;  %v655_v10 = vshrl.u32 %v599_v63, 16  ;;  %v3370_v45 = vld [vmem:[#allocation7 + $0x188] sm:$0xff]   ;;  %v601_v47 = vld [vmem:[#allocation2 + $0x20] sm:$0xf] }
  0x92   : > { %3100 = vmatpush3.bf16.msra.mxu0 %v3358_v6  ;;  %v1438_v3 = vor.u32 %v1437_v57, %v1434_v56  ;;  %v1619_v6 = vld [vmem:[#allocation2 + $0x18] sm:$0xe]  ;;  %v643_v9 = vrot.slane %v641_v1, 4  ;;  %v658_v11 = vshll.u32 %v599_v63, 16  ;;  %v646_v14 = vrot.slane %v644_v4, 5  ;;  %v3372_v57 = vld [vmem:[#allocation7 + $0x190] sm:$0xff]  }
  0x93   : > { %3101 = vmatprep.subr.bf16.mxu0 %v3360_v29  ;;  %3087 = vmatprep.mubr.bf16.mxu0 %v2773_v2  ;;  %v652_v15 = vrot.slane %v650_v5, 5  ;;  %v664_v16 = vshll.u32 %v600_v0, 16  ;;  %v657_v22 = vrot.slane %v655_v10, 4  ;;  %v2785_v25 = vrot.slane %v1619_v6, 9  ;;  %v602_v48 = vld [vmem:[#allocation2 + $0x24] sm:$0x1] }
  0x94   : > { %3010 = vmatpush3.bf16.msra.mxu1 %v3365_v18  ;;  %v1439_v13 = vrot.slane %v1438_v3, 4  ;;  %v1430_v18 = vsel %vm3770_vm8, %v1425_v8, %v1429_v55  ;;  %v660_v24 = vrot.slane %v658_v11, 5  ;;  %v647_v28 = vor.u32 %v646_v14, %v643_v9  ;;  %v603_v49 = vld [vmem:[#allocation2 + $0x28] sm:$0xf]  ;;  %v604_v50 = vld [vmem:[#allocation2 + $0x2c] sm:$0x1] }
  0x95   : > { %3019 = vmatprep.subr.bf16.mxu1 %v3827_v38  ;;  %v666_v30 = vrot.slane %v664_v16, 5  ;;  %v2786_v33 = vrot.slane %v1621_v12, 9  ;;  %v1661_v34 = vrot.slane %v1622_v17, 5  ;;  %v669_v51 = vshrl.u32 %v601_v47, 16  ;;  %v1623_v63 = vld [vmem:[#allocation2 + $0x28] sm:$0xe] }
  0x96   : > { %3102 = vmatpush3.bf16.msra.mxu0 %v3360_v29  ;;  %v1444_v26 = vsel %vm3770_vm8, %v1439_v13, %v1443_v58  ;;  %v1657_v29 = vrot.slane %v1620_v7, 5  ;;  %v661_v32 = vor.u32 %v660_v24, %v657_v22  ;;  %v648_v35 = vrot.slane %v647_v28, 4  ;;  %v1624_v0 = vld [vmem:[#allocation2 + $0x2c] sm:$0x1]  ;;  %v1625_v1 = vld [vmem:[#allocation2 + $0x30] sm:$0xe] }
  0x97   : > { %3103 = vmatprep.subr.bf16.mxu0 %v3363_v19  ;;  %v2774_v31 = vcombine.low %v1430_v18, %v1444_v26  ;;  %v1662_v41 = vsel %vm3817_vm11, %v2786_v33, %v1661_v34  ;;  %v672_v52 = vshll.u32 %v601_v47, 16  ;;  %v678_v53 = vshll.u32 %v602_v48, 16  ;;  %v1626_v2 = vld [vmem:[#allocation2 + $0x34] sm:$0x1]  ;;  %v3373_v3 = vld [vmem:[#allocation7 + $0x98] sm:$0xff]   ;;  %v3377_v48 = vld [vmem:[#allocation7 + $0xa8] sm:$0xff]  }
  0x98   : > { %v662_v37 = vrot.slane %v661_v32, 4  ;;  %v653_v39 = vsel %vm3770_vm8, %v648_v35, %v652_v15  ;;  %v1658_v40 = vsel %vm3817_vm11, %v2785_v25, %v1657_v29  ;;  %v683_v54 = vshrl.u32 %v603_v49, 16  ;;  %v3374_v8 = vld [vmem:[#allocation7 + $0x198] sm:$0xff]   ;;  %v605_v11 = vld [vmem:[#allocation2 + $0x30] sm:$0xf] }
  0x99   : > { %3088 = vmatmul.mubr.bf16.gmra.mrb[4].mxu0 %v2774_v31  ;;  %v2792_v44 = vcombine.low %v1658_v40, %v1662_v41  ;;  %v686_v55 = vshll.u32 %v603_v49, 16  ;;  %v692_v56 = vshll.u32 %v604_v50, 16  ;;  %v671_v58 = vrot.slane %v669_v51, 4  ;;  %v3375_v12 = vld [vmem:[#allocation7 + $0xa0] sm:$0xff]   ;;  %v607_v16 = vld [vmem:[#allocation2 + $0x38] sm:$0xf] }
  0x9a   : > { %3104 = vmatpush3.bf16.msra.mxu0 %v3363_v19  ;;  %3107 = vmatprep.mubr.bf16.mxu0 %v2791_v62  ;;  %v667_v43 = vsel %vm3770_vm8, %v662_v37, %v666_v30  ;;  %v674_v59 = vrot.slane %v672_v52, 5  ;;  %v680_v61 = vrot.slane %v678_v53, 5  ;;  %v685_v19 = vrot.slane %v683_v54, 4  ;;  %v606_v15 = vld [vmem:[#allocation2 + $0x34] sm:$0x1]  ;;  %v3378_v50 = vld [vmem:[#allocation7 + $0x1a8] sm:$0xff]  }
  0x9b   : > { %3105 = vmatprep.subr.bf16.mxu0 %v3366_v20  ;;  %v2728_v60 = vcombine.low %v653_v39, %v667_v43  ;;  %v688_v27 = vrot.slane %v686_v55, 5  ;;  %v694_v62 = vrot.slane %v692_v56, 5  ;;  %v2787_v5 = vrot.slane %v1623_v63, 9  ;;  %v608_v22 = vld [vmem:[#allocation2 + $0x3c] sm:$0x1] }
  0x9c   : > { %v1665_v6 = vrot.slane %v1624_v0, 5  ;;  %v2788_v7 = vrot.slane %v1625_v1, 9  ;;  %v1669_v10 = vrot.slane %v1626_v2, 5  ;;  %v697_v17 = vshrl.u32 %v605_v11, 16  ;;  %v1627_v26 = vld [vmem:[#allocation2 + $0x38] sm:$0xe] }
  0x9d   : > { %3012 = vmatmul.mubr.bf16.vlgmr.msra.gmra.mrb[0].mxu1 %v2728_v60  ;;  %v689_v4 = vor.u32 %v688_v27, %v685_v19  ;;  %v700_v24 = vshll.u32 %v605_v11, 16  ;;  %v706_v25 = vshll.u32 %v606_v15, 16  ;;  %v711_v31 = vshrl.u32 %v607_v16, 16  ;;  %v1628_v32 = vld [vmem:[#allocation2 + $0x3c] sm:$0x1]  ;;  %v3376_v60 = vld [vmem:[#allocation7 + $0x1a0] sm:$0xff]  }
  0x9e   : > { %3106 = vmatpush3.bf16.msra.mxu0 %v3366_v20  ;;  %3020 = vmatpush3.bf16.msra.mxu1 %v3827_v38  ;;  %v675_v38 = vor.u32 %v674_v59, %v671_v58  ;;  %v1666_v14 = vsel %vm3817_vm11, %v2787_v5, %v1665_v6  ;;  %v1670_v20 = vsel %vm3817_vm11, %v2788_v7, %v1669_v10  ;;  %v699_v29 = vrot.slane %v697_v17, 4  ;;  %v1629_v33 = vld [vmem:[#allocation2 + $0x40] sm:$0xe]  ;;  %v1630_v39 = vld [vmem:[#allocation2 + $0x44] sm:$0x1]  ;;  %v3381_v15 = vld [vmem:[#allocation7 + $0xb8] sm:$0xff]  }
  0x9f   : > { %3115 = vmatprep.subr.bf16.mxu0 %v3368_v36  ;;  %3021 = vmatprep.subr.bf16.mxu1 %v3369_v42  ;;  %v690_v13 = vrot.slane %v689_v4, 4  ;;  %v2793_v30 = vcombine.low %v1666_v14, %v1670_v20  ;;  %v702_v35 = vrot.slane %v700_v24, 5  ;;  %v714_v37 = vshll.u32 %v607_v16, 16  ;;  %v894_v55 = vld [vmem:[#allocation2] sm:$0xe]  ;;  %v3382_v17 = vld [vmem:[#allocation7 + $0x1b8] sm:$0xff]  }
  0xa0   : > { %v676_v9 = vrot.slane %v675_v38, 4  ;;  %v713_v40 = vrot.slane %v711_v31, 4  ;;  %v720_v41 = vshll.u32 %v608_v22, 16  ;;  %v1673_v43 = vrot.slane %v1628_v32, 5  ;;  %v895_v56 = vld [vmem:[#allocation2 + $0x4] sm:$0x1] }
  0xa1   : > { %3108 = vmatmul.mubr.bf16.vlgmr.msra.gmra.mrb[0].mxu0 %v2792_v44  ;;  %v695_v28 = vsel %vm3770_vm8, %v690_v13, %v694_v62  ;;  %v703_v44 = vor.u32 %v702_v35, %v699_v29  ;;  %v1677_v47 = vrot.slane %v1630_v39, 5  ;;  %v896_v58 = vld [vmem:[#allocation2 + $0x8] sm:$0xe]  ;;  %v897_v59 = vld [vmem:[#allocation2 + $0xc] sm:$0x1]  ;;  %v931_v19 = vrot.slane %v895_v56, 5 }
  0xa2   : > { %3116 = vmatpush3.bf16.msra.mxu0 %v3368_v36  ;;  %3022 = vmatpush3.bf16.msra.mxu1 %v3369_v42  ;;  %v681_v18 = vsel %vm3770_vm8, %v676_v9, %v680_v61  ;;  %v708_v36 = vrot.slane %v706_v25, 5  ;;  %v2789_v42 = vrot.slane %v1627_v26, 9  ;;  %v722_v53 = vrot.slane %v720_v41, 5  ;;  %v3379_v27 = vld [vmem:[#allocation7 + $0xb0] sm:$0xff]   ;;  %v3384_v4 = vld [vmem:[#allocation2 + $0x10] ss:$8 sps:$4 sm:$0xff]  }
  0xa3   : > { %3117 = vmatprep.subr.bf16.mxu0 %v3370_v45  ;;  %3023 = vmatprep.subr.bf16.mxu1 %v3371_v46  ;;  %v2729_v34 = vcombine.low %v681_v18, %v695_v28  ;;  %v704_v51 = vrot.slane %v703_v44, 4  ;;  %v2739_v61 = vrot.slane %v894_v55, 9  ;;  %v2740_v38 = vrot.slane %v896_v58, 9  ;;  %v898_v7 = vld [vmem:[#allocation2 + $0x10] sm:$0xe]  ;;  %v3380_v10 = vld [vmem:[#allocation7 + $0x1b0] sm:$0xff]  }
  0xa4   : > { %3111 = vmatprep.mubr.bf16.mxu0 %v2793_v30  ;;  %v1674_v49 = vsel %vm3817_vm11, %v2789_v42, %v1673_v43  ;;  %v935_v0 = vrot.slane %v897_v59, 5  ;;  %v900_v9 = vld [vmem:[#allocation2 + $0x18] sm:$0xe]  ;;  %v901_v11 = vld [vmem:[#allocation2 + $0x1c] sm:$0x1]  ;;  %v3383_v22 = vld [vmem:[#allocation7 + $0xc0] sm:$0xff]  }
  0xa5   : > { %3015 = vmatprep.mubr.bf16.mxu1 %v2729_v34  ;;  %v709_v62 = vsel %vm3770_vm8, %v704_v51, %v708_v36  ;;  %v932_v1 = vsel %vm3817_vm11, %v2739_v61, %v931_v19  ;;  %v2742_v14 = vrot.slane %v900_v9, 9  ;;  %v943_v16 = vrot.slane %v901_v11, 5  ;;  %v3385_v25 = vld [vmem:[#allocation7 + $0x1c0] sm:$0xff]   ;;  %v3387_v26 = vld [vmem:[#allocation7 + $0xc8] sm:$0xff]   ;;  %v3386_v28 = vld [vmem:[#allocation2 + $0x20] ss:$8 sps:$4 sm:$0xff]  }
  0xa6   : > { %3118 = vmatpush3.bf16.msra.mxu0 %v3370_v45  ;;  %3024 = vmatpush3.bf16.msra.mxu1 %v3371_v46  ;;  %v716_v45 = vrot.slane %v714_v37, 5  ;;  %v2790_v46 = vrot.slane %v1629_v33, 9  ;;  %v902_v30 = vld [vmem:[#allocation2 + $0x20] sm:$0xe]  ;;  %v903_v29 = vld [vmem:[#allocation2 + $0x24] sm:$0x1] }
  0xa7   : > { %3119 = vmatprep.subr.bf16.mxu0 %v3372_v57  ;;  %3025 = vmatprep.subr.bf16.mxu1 %v3373_v3  ;;  %v944_v20 = vsel %vm3817_vm11, %v2742_v14, %v943_v16  ;;  %v904_v31 = vld [vmem:[#allocation2 + $0x28] sm:$0xe]  ;;  %v3388_v32 = vld [vmem:[#allocation7 + $0x1c8] sm:$0xff]   ;;  %v905_v33 = vld [vmem:[#allocation2 + $0x2c] sm:$0x1]  ;;  %v2743_v34 = vrot.slane %v902_v30, 9 }
  0xa8   : > { %v717_v52 = vor.u32 %v716_v45, %v713_v40  ;;  %v1678_v54 = vsel %vm3817_vm11, %v2790_v46, %v1677_v47  ;;  %v947_v35 = vrot.slane %v903_v29, 5  ;;  %v2744_v36 = vrot.slane %v904_v31, 9  ;;  %v3389_v37 = vld [vmem:[#allocation7 + $0xd0] sm:$0xff]   ;;  %v3397_v42 = vld [vmem:[#allocation2 + $0x30] ss:$8 sps:$4 sm:$0xff]   ;;  %v3391_v44 = vld [vmem:[#allocation7 + $0xd8] sm:$0xff]  }
  0xa9   : > { %v951_v39 = vrot.slane %v905_v33, 5  ;;  %v3390_v40 = vld [vmem:[#allocation7 + $0x1d0] sm:$0xff]   ;;  %v906_v43 = vld [vmem:[#allocation2 + $0x30] sm:$0xe]  ;;  %v908_v46 = vld [vmem:[#allocation2 + $0x38] sm:$0xe] }
  0xaa   : > { %3120 = vmatpush3.bf16.msra.mxu0 %v3372_v57  ;;  %3026 = vmatpush3.bf16.msra.mxu1 %v3373_v3  ;;  %v2794_v57 = vcombine.low %v1674_v49, %v1678_v54  ;;  %v718_v63 = vrot.slane %v717_v52, 4  ;;  %v936_v3 = vsel %vm3817_vm11, %v2740_v38, %v935_v0  ;;  %v948_v41 = vsel %vm3817_vm11, %v2743_v34, %v947_v35  ;;  %v909_v47 = vld [vmem:[#allocation2 + $0x3c] sm:$0x1]  ;;  %v3399_v54 = vld [vmem:[#allocation2 + $0x40] ss:$8 sps:$4 sm:$0xff]   ;;  %v3393_v58 = vld [vmem:[#allocation7 + $0xe0] sm:$0xff]  }
  0xab   : > { %3121 = vmatprep.subr.bf16.mxu0 %v3374_v8  ;;  %3027 = vmatprep.subr.bf16.mxu1 %v3375_v12  ;;  %v2747_v6 = vcombine.low %v932_v1, %v936_v3  ;;  %v952_v45 = vsel %vm3817_vm11, %v2744_v36, %v951_v39  ;;  %v2746_v51 = vrot.slane %v908_v46, 9  ;;  %v959_v52 = vrot.slane %v909_v47, 5  ;;  %v3392_v56 = vld [vmem:[#allocation7 + $0x1d8] sm:$0xff]   ;;  %v2036_v61 = vld [vmem:[#allocation2 + $0x10] sm:$0xf]  ;;  %v3395_v3 = vld [vmem:[#allocation7 + $0xe8] sm:$0xff]  }
  0xac   : > { %3112 = vmatmul.mubr.bf16.gmra.mrb[4].mxu0 %v2794_v57  ;;  %v723_v2 = vsel %vm3770_vm8, %v718_v63, %v722_v53  ;;  %v3403_v59 = vld [vmem:[#allocation2 + $0x8] ss:$8 sps:$4 sm:$0xff]   ;;  %v2037_v19 = vld [vmem:[#allocation2 + $0x14] sm:$0x1]  ;;  %v2053_v63 = vshrl.u32 %v2036_v61, 16  ;;  %v2056_v38 = vshll.u32 %v2036_v61, 16 }
  0xad   : > { %v2730_v5 = vcombine.low %v709_v62, %v723_v2  ;;  %3131 = vmatprep.mubr.bf16.mxu0 %v3384_v4  ;;  %v960_v55 = vsel %vm3817_vm11, %v2746_v51, %v959_v52  ;;  %v2039_v62 = vld [vmem:[#allocation2 + $0x1c] sm:$0x1]  ;;  %v2062_v0 = vshll.u32 %v2037_v19, 16  ;;  %v3394_v2 = vld [vmem:[#allocation7 + $0x1e0] sm:$0xff]   ;;  %v2042_v14 = vld [vmem:[#allocation2 + $0x28] sm:$0xf] }
  0xae   : > { %3122 = vmatpush3.bf16.msra.mxu0 %v3374_v8  ;;  %3028 = vmatpush3.bf16.msra.mxu1 %v3375_v12  ;;  %v899_v8 = vld [vmem:[#allocation2 + $0x14] sm:$0x1]  ;;  %v2741_v12 = vrot.slane %v898_v7, 9  ;;  %v2058_v7 = vrot.slane %v2056_v38, 5  ;;  %v2043_v16 = vld [vmem:[#allocation2 + $0x2c] sm:$0x1] }
  0xaf   : > { %3123 = vmatprep.subr.bf16.mxu0 %v3376_v60  ;;  %3029 = vmatprep.subr.bf16.mxu1 %v3377_v48  ;;  %v939_v13 = vrot.slane %v899_v8, 5  ;;  %v2064_v8 = vrot.slane %v2062_v0, 5  ;;  %v3398_v30 = vld [vmem:[#allocation7 + $0xf0] sm:$0xff]  }
  0xb0   : > { %3016 = vmatmul.mubr.bf16.gmra.mrb[4].mxu1 %v2730_v5  ;;  %v2076_v5 = vshll.u32 %v2039_v62, 16  ;;  %v3400_v33 = vld [vmem:[#allocation7 + $0x1f0] sm:$0xff]  }
  0xb1   : > { %3035 = vmatprep.mubr.bf16.mxu1 %v2747_v6  ;;  %v940_v18 = vsel %vm3817_vm11, %v2741_v12, %v939_v13  ;;  %v2055_v6 = vrot.slane %v2053_v63, 4  ;;  %v2041_v13 = vld [vmem:[#allocation2 + $0x24] sm:$0x1]  ;;  %v3404_v62 = vld [vmem:[#allocation2 + $0x18] ss:$8 sps:$4 sm:$0xff]  }
  0xb2   : > { %3124 = vmatpush3.bf16.msra.mxu0 %v3376_v60  ;;  %3030 = vmatpush3.bf16.msra.mxu1 %v3377_v48  ;;  %v2748_v24 = vcombine.low %v940_v18, %v944_v20  ;;  %v907_v60 = vld [vmem:[#allocation2 + $0x34] sm:$0x1]  ;;  %v2745_v48 = vrot.slane %v906_v43, 9  ;;  %v2078_v12 = vrot.slane %v2076_v5, 5  ;;  %v2090_v20 = vshll.u32 %v2041_v13, 16 }
  0xb3   : > { %3125 = vmatprep.subr.bf16.mxu0 %v3378_v50  ;;  %3031 = vmatprep.subr.bf16.mxu1 %v3379_v27  ;;  %v955_v49 = vrot.slane %v907_v60, 5  ;;  %v2050_v5 = vld [vmem:[#allocation2 + $0x48] sm:$0xf] }
  0xb4   : > { %v2154_v13 = vshll.u32 %v2050_v5, 16 }
  0xb5   : > { %v956_v53 = vsel %vm3817_vm11, %v2745_v48, %v955_v49  ;;  %v2046_v48 = vld [vmem:[#allocation2 + $0x38] sm:$0xf]  ;;  %v2047_v49 = vld [vmem:[#allocation2 + $0x3c] sm:$0x1] }
  0xb6   : > { %3126 = vmatpush3.bf16.msra.mxu0 %v3378_v50  ;;  %3032 = vmatpush3.bf16.msra.mxu1 %v3379_v27  ;;  %v2749_v50 = vcombine.low %v948_v41, %v952_v45  ;;  %v2750_v57 = vcombine.low %v956_v53, %v960_v55  ;;  %v2038_v27 = vld [vmem:[#allocation2 + $0x18] sm:$0xf]  ;;  %v2045_v45 = vld [vmem:[#allocation2 + $0x34] sm:$0x1] }
  0xb7   : > { %3127 = vmatprep.subr.bf16.mxu0 %v3380_v10  ;;  %3033 = vmatprep.subr.bf16.mxu1 %v3381_v15  ;;  %v2067_v1 = vshrl.u32 %v2038_v27, 16  ;;  %v2070_v4 = vshll.u32 %v2038_v27, 16  ;;  %v2118_v53 = vshll.u32 %v2045_v45, 16 }
  0xb9   : > { %v2069_v9 = vrot.slane %v2067_v1, 4  ;;  %v2072_v11 = vrot.slane %v2070_v4, 5  ;;  %v2120_v19 = vrot.slane %v2118_v53, 5  ;;  %v2048_v1 = vld [vmem:[#allocation2 + $0x40] sm:$0xf] }
  0xba   : > { %3128 = vmatpush3.bf16.msra.mxu0 %v3380_v10  ;;  %3034 = vmatpush3.bf16.msra.mxu1 %v3381_v15  ;;  %v2040_v10 = vld [vmem:[#allocation2 + $0x20] sm:$0xf]  ;;  %v2059_v15 = vor.u32 %v2058_v7, %v2055_v6  ;;  %v2051_v6 = vld [vmem:[#allocation2 + $0x4c] sm:$0x1]  ;;  %v2137_v7 = vshrl.u32 %v2048_v1, 16 }
  0xbb   : > { %3129 = vmatprep.subr.bf16.mxu0 %v3382_v17  ;;  %3043 = vmatprep.subr.bf16.mxu1 %v3383_v22  ;;  %v2084_v18 = vshll.u32 %v2040_v10, 16  ;;  %v2345_v53 = vld [vmem:[#allocation2 + $0x3c] sm:$0x1] }
  0xbc   : > { %v2060_v29 = vrot.slane %v2059_v15, 4  ;;  %v2139_v15 = vrot.slane %v2137_v7, 4  ;;  %v2341_v7 = vld [vmem:[#allocation2 + $0x2c] sm:$0x1] }
  0xbd   : > { %3036 = vmatmul.mubr.bf16.vlgmr.msra.gmra.mrb[0].mxu1 %v2748_v24  ;;  %v2073_v24 = vor.u32 %v2072_v11, %v2069_v9  ;;  %v3407_v9 = vld [vmem:[#allocation2 + $0x28] ss:$8 sps:$4 sm:$0xff]  }
  0xbe   : > { %3130 = vmatpush3.bf16.msra.mxu0 %v3382_v17  ;;  %3044 = vmatpush3.bf16.msra.mxu1 %v3383_v22  ;;  %v2081_v17 = vshrl.u32 %v2040_v10, 16  ;;  %v3396_v22 = vld [vmem:[#allocation7 + $0x1e8] sm:$0xff]   ;;  %v2065_v39 = vsel %vm3770_vm8, %v2060_v29, %v2064_v8  ;;  %v2140_v8 = vshll.u32 %v2048_v1, 16  ;;  %v2347_v1 = vld [vmem:[#allocation2 + $0x44] sm:$0x1] }
  0xbf   : > { %3139 = vmatprep.subr.bf16.mxu0 %v3385_v25  ;;  %3045 = vmatprep.subr.bf16.mxu1 %v3387_v26  ;;  %v2074_v34 = vrot.slane %v2073_v24, 4 }
  0xc0   : > { %3039 = vmatprep.mubr.bf16.mxu1 %v2749_v50  ;;  %v2083_v31 = vrot.slane %v2081_v17, 4  ;;  %v2160_v17 = vshll.u32 %v2051_v6, 16  ;;  %v2340_v6 = vld [vmem:[#allocation2 + $0x28] sm:$0xe] }
  0xc1   : > { %3132 = vmatmul.mubr.bf16.vlgmr.msra.gmra.mrb[0].mxu0 %v3386_v28  ;;  %v2104_v28 = vshll.u32 %v2043_v16, 16  ;;  %v2079_v41 = vsel %vm3770_vm8, %v2074_v34, %v2078_v12  ;;  %v2151_v12 = vshrl.u32 %v2050_v5, 16  ;;  %v2142_v16 = vrot.slane %v2140_v8, 5  ;;  %v2339_v5 = vld [vmem:[#allocation2 + $0x24] sm:$0x1] }
  0xc2   : > { %3140 = vmatpush3.bf16.msra.mxu0 %v3385_v25  ;;  %3046 = vmatpush3.bf16.msra.mxu1 %v3387_v26  ;;  %v2095_v25 = vshrl.u32 %v2042_v14, 16  ;;  %v2098_v26 = vshll.u32 %v2042_v14, 16  ;;  %v2815_v46 = vcombine.low %v2065_v39, %v2079_v41  ;;  %v2162_v29 = vrot.slane %v2160_v17, 5  ;;  %v2335_v41 = vld [vmem:[#allocation2 + $0x14] sm:$0x1] }
  0xc3   : > { %3141 = vmatprep.subr.bf16.mxu0 %v3388_v32  ;;  %3047 = vmatprep.subr.bf16.mxu1 %v3389_v37  ;;  %v2106_v60 = vrot.slane %v2104_v28, 5  ;;  %v2153_v24 = vrot.slane %v2151_v12, 4  ;;  %v2143_v28 = vor.u32 %v2142_v16, %v2139_v15  ;;  %v2368_v45 = vrot.slane %v2335_v41, 5  ;;  %v3414_v12 = vld [vmem:[#allocation7 + $0x238] sm:$0xff]  }
  0xc4   : > { %3135 = vmatprep.mubr.bf16.mxu0 %v3397_v42  ;;  %v2097_v35 = vrot.slane %v2095_v25, 4  ;;  %v2100_v36 = vrot.slane %v2098_v26, 5  ;;  %v2092_v42 = vrot.slane %v2090_v20, 5  ;;  %v3406_v20 = vld [vmem:[#allocation7 + $0x208] sm:$0xff]   ;;  %v2156_v25 = vrot.slane %v2154_v13, 5 }
  0xc5   : > { %3040 = vmatmul.mubr.bf16.gmra.mrb[4].mxu1 %v2750_v57  ;;  %v2132_v57 = vshll.u32 %v2047_v49, 16  ;;  %v2144_v34 = vrot.slane %v2143_v28, 4  ;;  %v2342_v49 = vld [vmem:[#allocation2 + $0x30] sm:$0xe]  ;;  %v2830_v15 = vrot.slane %v2340_v6, 9  ;;  %v2380_v16 = vrot.slane %v2341_v7, 5 }
  0xc6   : > { %3142 = vmatpush3.bf16.msra.mxu0 %v3388_v32  ;;  %3048 = vmatpush3.bf16.msra.mxu1 %v3389_v37  ;;  %v2086_v32 = vrot.slane %v2084_v18, 5  ;;  %v3401_v37 = vld [vmem:[#allocation7 + $0xf8] sm:$0xff]   ;;  %v2101_v43 = vor.u32 %v2100_v36, %v2097_v35  ;;  %v3408_v35 = vld [vmem:[#allocation2 + $0x38] ss:$8 sps:$4 sm:$0xff]  }
  0xc7   : > { %3143 = vmatprep.subr.bf16.mxu0 %v3390_v40  ;;  %3049 = vmatprep.subr.bf16.mxu1 %v3391_v44  ;;  %v2134_v0 = vrot.slane %v2132_v57, 5 }
  0xc8   : > { %3059 = vmatprep.mubr.bf16.mxu1 %v3403_v59  ;;  %v2102_v51 = vrot.slane %v2101_v43, 4  ;;  %v3405_v59 = vld [vmem:[#allocation7 + $0x200] sm:$0xff]  }
  0xc9   : > { %3136 = vmatmul.mubr.bf16.gmra.mrb[4].mxu0 %v3399_v54  ;;  %v2123_v54 = vshrl.u32 %v2046_v48, 16 }
  0xca   : > { %3144 = vmatpush3.bf16.msra.mxu0 %v3390_v40  ;;  %3050 = vmatpush3.bf16.msra.mxu1 %v3391_v44  ;;  %v2087_v40 = vor.u32 %v2086_v32, %v2083_v31  ;;  %v2044_v44 = vld [vmem:[#allocation2 + $0x30] sm:$0xf]  ;;  %v2157_v32 = vor.u32 %v2156_v25, %v2153_v24 }
  0xcb   : > { %3145 = vmatprep.subr.bf16.mxu0 %v3392_v56  ;;  %3051 = vmatprep.subr.bf16.mxu1 %v3393_v58  ;;  %v2109_v50 = vshrl.u32 %v2044_v44, 16  ;;  %v2112_v52 = vshll.u32 %v2044_v44, 16  ;;  %v2125_v27 = vrot.slane %v2123_v54, 4  ;;  %v2831_v54 = vrot.slane %v2342_v49, 9 }
  0xcc   : > { %v2088_v47 = vrot.slane %v2087_v40, 4  ;;  %3155 = vmatprep.mubr.bf16.mxu0 %v2815_v46  ;;  %v2158_v36 = vrot.slane %v2157_v32, 4  ;;  %v2334_v40 = vld [vmem:[#allocation2 + $0x10] sm:$0xe] }
  0xcd   : > { %v2111_v55 = vrot.slane %v2109_v50, 4  ;;  %v2114_v61 = vrot.slane %v2112_v52, 5  ;;  %v2827_v44 = vrot.slane %v2334_v40, 9  ;;  %v2343_v50 = vld [vmem:[#allocation2 + $0x34] sm:$0x1] }
  0xce   : > { %3146 = vmatpush3.bf16.msra.mxu0 %v3392_v56  ;;  %3052 = vmatpush3.bf16.msra.mxu1 %v3393_v58  ;;  %v2126_v56 = vshll.u32 %v2046_v48, 16  ;;  %v3402_v58 = vld [vmem:[#allocation7 + $0x1f8] sm:$0xff]   ;;  %v2093_v63 = vsel %vm3770_vm8, %v2088_v47, %v2092_v42  ;;  %v2336_v42 = vld [vmem:[#allocation2 + $0x18] sm:$0xe]  ;;  %v2163_v43 = vsel %vm3770_vm8, %v2158_v36, %v2162_v29 }
  0xcf   : > { %3147 = vmatprep.subr.bf16.mxu0 %v3394_v2  ;;  %3053 = vmatprep.subr.bf16.mxu1 %v3395_v3  ;;  %v2115_v4 = vor.u32 %v2114_v61, %v2111_v55  ;;  %v2828_v46 = vrot.slane %v2336_v42, 9  ;;  %v3410_v47 = vld [vmem:[#allocation7 + $0x218] sm:$0xff]   ;;  %v2344_v52 = vld [vmem:[#allocation2 + $0x38] sm:$0xe]  ;;  %v2384_v55 = vrot.slane %v2343_v50, 5 }
  0xd0   : > { %v2128_v38 = vrot.slane %v2126_v56, 5  ;;  %v2832_v57 = vrot.slane %v2344_v52, 9 }
  0xd1   : > { %v2116_v14 = vrot.slane %v2115_v4, 4  ;;  %v2385_v61 = vsel %vm3817_vm11, %v2831_v54, %v2384_v55  ;;  %v2338_v4 = vld [vmem:[#allocation2 + $0x20] sm:$0xe] }
  0xd2   : > { %3148 = vmatpush3.bf16.msra.mxu0 %v3394_v2  ;;  %3054 = vmatpush3.bf16.msra.mxu1 %v3395_v3  ;;  %v2049_v2 = vld [vmem:[#allocation2 + $0x44] sm:$0x1]  ;;  %v2107_v3 = vsel %vm3770_vm8, %v2102_v51, %v2106_v60  ;;  %v2129_v10 = vor.u32 %v2128_v38, %v2125_v27  ;;  %v2337_v60 = vld [vmem:[#allocation2 + $0x1c] sm:$0x1]  ;;  %v2369_v51 = vsel %vm3817_vm11, %v2827_v44, %v2368_v45  ;;  %v3411_v27 = vld [vmem:[#allocation7 + $0x220] sm:$0xff]   ;;  %v2829_v13 = vrot.slane %v2338_v4, 9 }
  0xd3   : > { %3149 = vmatprep.subr.bf16.mxu0 %v3396_v22  ;;  %3055 = vmatprep.subr.bf16.mxu1 %v3398_v30  ;;  %v2146_v11 = vshll.u32 %v2049_v2, 16  ;;  %v2816_v18 = vcombine.low %v2093_v63, %v2107_v3  ;;  %v2121_v26 = vsel %vm3770_vm8, %v2116_v14, %v2120_v19  ;;  %v2372_v48 = vrot.slane %v2337_v60, 5  ;;  %v3412_v63 = vld [vmem:[#allocation7 + $0x228] sm:$0xff]   ;;  %v3413_v38 = vld [vmem:[#allocation7 + $0x230] sm:$0xff]   ;;  %v2348_v2 = vld [vmem:[#allocation2 + $0x48] sm:$0xe] }
  0xd4   : > { %v2349_v3 = vld [vmem:[#allocation2 + $0x4c] sm:$0x1]  ;;  %v2376_v14 = vrot.slane %v2339_v5, 5 }
  0xd5   : > { %v2373_v56 = vsel %vm3817_vm11, %v2828_v46, %v2372_v48 }
  0xd6   : > { %3150 = vmatpush3.bf16.msra.mxu0 %v3396_v22  ;;  %3056 = vmatpush3.bf16.msra.mxu1 %v3398_v30  ;;  %v2130_v22 = vrot.slane %v2129_v10, 4  ;;  %v2148_v30 = vrot.slane %v2146_v11, 5  ;;  %v2834_v10 = vrot.slane %v2348_v2, 9  ;;  %v2396_v11 = vrot.slane %v2349_v3, 5 }
  0xd7   : > { %3151 = vmatprep.subr.bf16.mxu0 %v3400_v33  ;;  %3057 = vmatprep.subr.bf16.mxu1 %v3401_v37 }
  0xd8   : > { %v2135_v31 = vsel %vm3770_vm8, %v2130_v22, %v2134_v0  ;;  %v2149_v39 = vsel %vm3770_vm8, %v2144_v34, %v2148_v30  ;;  %v2346_v0 = vld [vmem:[#allocation2 + $0x40] sm:$0xe]  ;;  %v2381_v22 = vsel %vm3817_vm11, %v2830_v15, %v2380_v16 }
  0xd9   : > { %v2818_v23 = vcombine.low %v2149_v39, %v2163_v43  ;;  %v2833_v8 = vrot.slane %v2346_v0, 9  ;;  %v2847_v43 = vld [vmem:[%s3978_s2] ss:$0 sm:$0xff] }
  0xda   : > { %3152 = vmatpush3.bf16.msra.mxu0 %v3400_v33  ;;  %3058 = vmatpush3.bf16.msra.mxu1 %v3401_v37  ;;  %v2817_v33 = vcombine.low %v2121_v26, %v2135_v31  ;;  %v3409_v37 = vld [vmem:[#allocation7 + $0x210] sm:$0xff]  }
  0xdb   : > { %3153 = vmatprep.subr.bf16.mxu0 %v3402_v58  ;;  %3187 = vmatprep.subr.bf16.mxu1 %v3405_v59 }
  0xdd   : > { %3060 = vmatmul.mubr.bf16.vlgmr.msra.gmra.mrb[0].mxu1 %v3404_v62 }
  0xde   : > { %3154 = vmatpush3.bf16.msra.mxu0 %v3402_v58  ;;  %3195 = vmatpush3.bf16.msra.mxu1 %v3405_v59  ;;  %v2388_v58 = vrot.slane %v2345_v53, 5 }
  0xdf   : > { %3163 = vmatprep.subr.bf16.mxu0 %v3405_v59  ;;  %3188 = vmatprep.subr.bf16.mxu1 %v3406_v20 }
  0xe0   : > { %3063 = vmatprep.mubr.bf16.mxu1 %v3407_v9  ;;  %v2389_v19 = vsel %vm3817_vm11, %v2832_v57, %v2388_v58  ;;  %v2392_v9 = vrot.slane %v2347_v1, 5 }
  0xe1   : > { %3156 = vmatmul.mubr.bf16.vlgmr.msra.gmra.mrb[0].mxu0 %v2816_v18  ;;  %v2837_v62 = vcombine.low %v2385_v61, %v2389_v19  ;;  %v2397_v18 = vsel %vm3817_vm11, %v2834_v10, %v2396_v11 }
  0xe2   : > { %3164 = vmatpush3.bf16.msra.mxu0 %v3405_v59  ;;  %3159 = vmatprep.mubr.bf16.mxu0 %v2817_v33  ;;  %v2835_v59 = vcombine.low %v2369_v51, %v2373_v56  ;;  %v2393_v17 = vsel %vm3817_vm11, %v2833_v8, %v2392_v9 }
  0xe3   : > { %3165 = vmatprep.subr.bf16.mxu0 %v3406_v20  ;;  %3196 = vmatpush3.bf16.msra.mxu1 %v3406_v20  ;;  %v2838_v24 = vcombine.low %v2393_v17, %v2397_v18 }
  0xe4   : > { %3189 = vmatprep.subr.bf16.mxu1 %v3409_v37 }
  0xe5   : > { %3064 = vmatmul.mubr.bf16.gmra.mrb[4].mxu1 %v3408_v35 }
  0xe6   : > { %3166 = vmatpush3.bf16.msra.mxu0 %v3406_v20  ;;  %3183 = vmatprep.mubr.bf16.mxu1 %v2837_v62  ;;  %v2377_v20 = vsel %vm3817_vm11, %v2829_v13, %v2376_v14 }
  0xe7   : > { %3167 = vmatprep.subr.bf16.mxu0 %v3409_v37  ;;  %3197 = vmatpush3.bf16.msra.mxu1 %v3409_v37  ;;  %v2836_v25 = vcombine.low %v2377_v20, %v2381_v22 }
  0xe8   : > { %3190 = vmatprep.subr.bf16.mxu1 %v3410_v47 }
  0xe9   : > { %3160 = vmatmul.mubr.bf16.gmra.mrb[4].mxu0 %v2818_v23 }
  0xea   : > { %3168 = vmatpush3.bf16.msra.mxu0 %v3409_v37  ;;  %3179 = vmatprep.mubr.bf16.mxu0 %v2835_v59 }
  0xeb   : > { %3169 = vmatprep.subr.bf16.mxu0 %v3410_v47  ;;  %3198 = vmatpush3.bf16.msra.mxu1 %v3410_v47 }
  0xec   : > { %3191 = vmatprep.subr.bf16.mxu1 %v3411_v27 }
  0xee   : > { %3170 = vmatpush3.bf16.msra.mxu0 %v3410_v47 }
  0xef   : > { %3171 = vmatprep.subr.bf16.mxu0 %v3411_v27  ;;  %3199 = vmatpush3.bf16.msra.mxu1 %v3411_v27 }
  0xf0   : > { %3192 = vmatprep.subr.bf16.mxu1 %v3412_v63 }
  0xf2   : > { %3172 = vmatpush3.bf16.msra.mxu0 %v3411_v27 }
  0xf3   : > { %3173 = vmatprep.subr.bf16.mxu0 %v3412_v63  ;;  %3200 = vmatpush3.bf16.msra.mxu1 %v3412_v63 }
  0xf4   : > { %3193 = vmatprep.subr.bf16.mxu1 %v3413_v38 }
  0xf6   : > { %3174 = vmatpush3.bf16.msra.mxu0 %v3412_v63 }
  0xf7   : > { %3175 = vmatprep.subr.bf16.mxu0 %v3413_v38  ;;  %3201 = vmatpush3.bf16.msra.mxu1 %v3413_v38 }
  0xf8   : > { %3194 = vmatprep.subr.bf16.mxu1 %v3414_v12 }
  0xfa   : > { %3176 = vmatpush3.bf16.msra.mxu0 %v3413_v38 }
  0xfb   : > { %3177 = vmatprep.subr.bf16.mxu0 %v3414_v12  ;;  %3202 = vmatpush3.bf16.msra.mxu1 %v3414_v12 }
  0xfe   : > { %3178 = vmatpush3.bf16.msra.mxu0 %v3414_v12  ;;  %3184 = vmatmul.mubr.bf16.vlgmr.msra.gmra.mrb[8].mxu1 %v2838_v24 }
 0x101   : > { %3180 = vmatmul.mubr.bf16.vlgmr.msra.gmra.mrb[0].mxu0 %v2836_v25 }
 0x1b0   : > { %v3061_v26 = vpop.f32.mrb[0].mxu1 }
 0x1b1   : > { %v1270_v28 = vpop.f32.mrb[1].mxu1 }
 0x1b2   : > { %v3062_v30 = vpop.f32.mrb[2].mxu1 }
 0x1b3   : > { %v1273_v29 = vpop.f32.mrb[3].mxu1 }
 0x1b8   : > { %v3065_v31 = vpop.f32.mrb[4].mxu1 }
 0x1b9   : > { %v1286_v32 = vpop.f32.mrb[5].mxu1 }
 0x1ba   : > { %v3066_v33 = vpop.f32.mrb[6].mxu1 }
 0x1bb   : > { %v1289_v35 = vpop.f32.mrb[7].mxu1 }
 0x1bc   : > { %v3161_v34 = vpop.f32.mrb[4].mxu0 }
 0x1bd   : > { %v3207_v36 = vadd.f32 %v3161_v34, %v3065_v31  ;;  %v2303_v37 = vpop.f32.mrb[5].mxu0 }
 0x1be   : > { %v3209_v21 = vadd.f32 %v2303_v37, %v1286_v32  ;;  %v3162_v39 = vpop.f32.mrb[6].mxu0 }
 0x1bf   : > { %v3211_v40 = vadd.f32 %v3162_v39, %v3066_v33  ;;  %v2306_v41 = vpop.f32.mrb[7].mxu0 }
 0x1c0   : > { %v3213_v42 = vadd.f32 %v2306_v41, %v1289_v35 }
 0x1d1   : > { %v3185_v60 = vpop.f32.mrb[8].mxu1 }
 0x1d2   : > { %v3208_v44 = vadd.f32 %v3207_v36, %v3185_v60  ;;  %v2537_v45 = vpop.f32.mrb[9].mxu1 }
 0x1d3   : > { %v3210_v46 = vadd.f32 %v3209_v21, %v2537_v45  ;;  %v3186_v47 = vpop.f32.mrb[10].mxu1 }
 0x1d4   : > { %v3181_v48 = vpop.f32.mrb[0].mxu0  ;;  %v2589_v49 = vadd.f32 %v3208_v44, %v2847_v43  ;;  %v3212_v50 = vadd.f32 %v3211_v40, %v3186_v47  ;;  %v2540_v51 = vpop.f32.mrb[11].mxu1 }
 0x1d5   : > { %v3203_v52 = vadd.f32 %v3181_v48, %v3061_v26  ;;  %v2521_v53 = vpop.f32.mrb[1].mxu0  ;;  %v2587_v54 = vadd.f32 %v3210_v46, %v2847_v43  ;;  %v3214_v55 = vadd.f32 %v3213_v42, %v2540_v51 }
 0x1d6   : > { %2597 = vst [vmem:[%s203_s4 + $0x30] sm:$0xff] %v2589_v49  ;;  %v3204_v23 = vadd.f32 %v2521_v53, %v1270_v28  ;;  %v3182_v56 = vpop.f32.mrb[2].mxu0  ;;  %v2590_v57 = vadd.f32 %v3212_v50, %v2847_v43 }
 0x1d7   : > { %v2585_v58 = vadd.f32 %v3203_v52, %v2847_v43  ;;  %2595 = vst [vmem:[%s203_s4 + $0x20] sm:$0xff] %v2587_v54  ;;  %v3205_v59 = vadd.f32 %v3182_v56, %v3062_v30  ;;  %v2524_v61 = vpop.f32.mrb[3].mxu0  ;;  %v2588_v19 = vadd.f32 %v3214_v55, %v2847_v43 }
 0x1d8   : > { %v2583_v27 = vadd.f32 %v3204_v23, %v2847_v43  ;;  %2598 = vst [vmem:[%s203_s4 + $0x38] sm:$0xff] %v2590_v57  ;;  %v3206_v62 = vadd.f32 %v2524_v61, %v1273_v29 }
 0x1d9   : > { %2593 = vst [vmem:[%s203_s4 + $0x10] sm:$0xff] %v2585_v58  ;;  %v2586_v63 = vadd.f32 %v3205_v59, %v2847_v43  ;;  %2596 = vst [vmem:[%s203_s4 + $0x28] sm:$0xff] %v2588_v19 }
 0x1da   : > { %2591 = vst [vmem:[%s203_s4] sm:$0xff] %v2583_v27  ;;  %v2584_v38 = vadd.f32 %v3206_v62, %v2847_v43 }
 0x1db   : > { %2594 = vst [vmem:[%s203_s4 + $0x18] sm:$0xff] %v2586_v63 }
 0x1dc   : > { %2592 = vst [vmem:[%s203_s4 + $0x8] sm:$0xff] %v2584_v38 }
 0x1dd   : > { %3486 = shalt.err (!%p3483_p7)
}
 0x1de   : > { %s3487_s30 = scalar_lea.hbm %s3932_s10, 1024  ;;  %s3491_s8 = scalar_lea.hbm %s3979_s3, 2048 }
 0x1df   : > { %p3488_p9 = scmp.ne.s32.totalorder %s3932_s10, %s3487_s30  ;;  %p3492_p5 = scmp.lt.u32.totalorder %s3932_s10, %s3979_s3 }
 0x1e0   : > { %p3493_p11 = scmp.lt.u32.totalorder %s3491_s8, %s3487_s30  ;;  %p3495_p4 = scmp.lt.u32.totalorder %s3487_s30, %s3932_s10 }
 0x1e1   : > { %p3489_p2 = pnand %p3488_p9, %p3666_p12 }
 0x1e2   : > { %p3494_p1 = por %p3493_p11, %p3492_p5 }
 0x1e3   : > { %p3490_p0 = pneg %p3489_p2 }
 0x1e4   : > { %p3496_p6 = por %p3495_p4, %p3494_p1 }
 0x1e6   : > { %p3497_p8 = pnand %p3496_p6, %p3490_p0 }
 0x1e8   : > { %3500 = shalt.err (!%p3497_p8)
}
 0x1e9   : > { %s3553_s20 = smov 128   ;;  %s3554_s4 = smov 8  }
 0x1ea   : > { %3273 = dma.vmem_to_hbm [thread:$0]  (%p3666_p12), %s3927_s25, 1024, %s3932_s10, %s2600_s11, %s3553_s20, %s3553_s20, %s3554_s4  }
 0x1eb PF: > { %s2628_s26 = sand.u32 1, %s3531_s12   ;;  %p4002_p10 = scmp.ne.s32.totalorder %s3984_s19, 0 }
 0x1ec   : > { %p4003_p13 = scmp.ge.s32.totalorder %s3543_s15, 2  ;;  %s2629_s5 = scalar_lea.sflag [#allocation6], %s2628_s26 }
 0x1ee   : > { %p3284_p3 = pnand %p4003_p13, %p4002_p10 }
 0x1f0   : > { %3526 = dma.done.wait (!%p3284_p3), %s2629_s5, 1024  }
 0x1f1   : > { %3528 = vsyncadd (!%p3284_p3), %s2629_s5, 4294966272  ;;  %p17_p7 = scmp.ge.s32.totalorder %s3631_s24, 4   ;;  %s4004_s12 = smov %s3535_s13 }
 0x1f2   : > { %s4005_s13 = smov %s3539_s14  ;;  %s4006_s14 = smov %s3662_s17 }
 0x1f3   : > { %s4007_s15 = smov %s3631_s24  ;;  %19 = sbr.rel (!%p17_p7) target bundleno = 6 (0x6), region = 91 }
 0x1fa   :  { %2634 = vsyncpa [#allocation5], 1 }
 0x1fb   :  { %2636 = vsyncpa [#allocation5 + $0x1], 1 }
 0x1fc   :  { %2637 = vsyncpa [#allocation8], 1 }
 0x1fd   :  { %2638 = vsyncpa [#allocation6], 1 }
 0x1fe   :  { %2640 = vsyncpa [#allocation6 + $0x1], 1 }

</bundles_post_ra>
